<compile_context>
chip_gen: v6e
topology: v6e:2x2x1
jax: 0.10.0
libtpu: 0.0.40
codegen_flags: <defaults>
</compile_context>

<pallas_src>
import functools
import math

import numpy as np
import jax
import jax.numpy as jnp
from jax.experimental import pallas as pl
from jax.experimental.pallas import tpu as pltpu  # noqa: F401  (kept for TPU-specific params)

# ----------------------------- model hyper-params (small synthetic config) -----------------
HIDDEN = 32
HEADS = 2
HEAD_DIM = HIDDEN // HEADS          # 16
ROT_DIM = HEAD_DIM // 2             # 8   (2D position encoding -> rotary over half head dim)
INNER = 4 * HIDDEN                  # 128 (GLU inner_hidden_size)
NUM_LAYERS = 2
SEQ = 8
BATCH = 2
VOCAB = 512
EPS = 1e-5
BOS_ID = 6                          # stands in for config.bos_token_id
MASK_ID = 510                       # stands in for 150000 (MASK)
GMASK_ID = 511                      # stands in for 150001 (gMASK)
ALPHA = (2 * NUM_LAYERS) ** 0.5     # GLMBlock residual scaling


# ----------------------------------- fused Pallas kernel -----------------------------------
def _glm_forward_kernel(
    x_ref,                      # [M, H]        f32   embeddings, rows = b*SEQ + s
    cos_ref, sin_ref,           # [M, HEAD_DIM] f32   rotary tables (pos-half ++ block-half)
    rot_ref,                    # [HEAD_DIM, HEAD_DIM] f32 block-diag rotate_half permutation
    bias_ref,                   # [S, S]        f32   additive attention mask (0 / -10000)
    ln1g_ref, ln1b_ref,         # [L, 1, H]     f32
    ln2g_ref, ln2b_ref,         # [L, 1, H]     f32
    wq_ref, wk_ref, wv_ref,     # [L*nh, H, hd] bf16  per-head projection weights
    bq_ref, bk_ref, bv_ref,     # [L*nh, 1, hd] f32
    wd_ref,                     # [L*nh, hd, H] bf16  per-head rows of the dense weight
    bd_ref,                     # [L, 1, H]     f32
    w1_ref, b1_ref,             # [L, H, INNER] bf16 / [L, 1, INNER] f32
    w2_ref, b2_ref,             # [L, INNER, H] bf16 / [L, 1, H]     f32
    lnfg_ref, lnfb_ref,         # [1, H]        f32
    o_ref,                      # [M, H]        f32
    *, num_layers, num_heads, batch, seq, head_dim, alpha, eps,
):
    def layer_norm(x, g, b):
        mu = jnp.mean(x, axis=-1, keepdims=True)
        xc = x - mu
        var = jnp.mean(xc * xc, axis=-1, keepdims=True)   # biased variance (torch LayerNorm)
        return xc * jax.lax.rsqrt(var + eps) * g + b

    h = x_ref[...]                                         # [M, H] f32
    cos = cos_ref[...]                                     # [M, hd]
    sin = sin_ref[...]
    rot = rot_ref[...]                                     # [hd, hd]
    bias = bias_ref[...]                                   # [S, S]  (broadcasts over batch)

    for layer in range(num_layers):                        # static unroll (NUM_LAYERS = 2)
        coeff = float(layer + 1)                           # query_key_layer_scaling_coeff
        inv_scale = 1.0 / (math.sqrt(head_dim) * coeff)

        # ---- input_layernorm + self attention ------------------------------------------
        attn_in = layer_norm(h, ln1g_ref[layer], ln1b_ref[layer])       # [M, H] f32
        x_bf = attn_in.astype(jnp.bfloat16)

        attn_out = None
        for hh in range(num_heads):                        # static unroll (HEADS = 2)
            idx = layer * num_heads + hh
            q = jnp.dot(x_bf, wq_ref[idx], preferred_element_type=jnp.float32) + bq_ref[idx]
            k = jnp.dot(x_bf, wk_ref[idx], preferred_element_type=jnp.float32) + bk_ref[idx]
            v = jnp.dot(x_bf, wv_ref[idx], preferred_element_type=jnp.float32) + bv_ref[idx]

            # 2D-rotary: x*cos + rotate_half(x)*sin ; rotate_half is a signed block-diag
            # permutation expressed as a tiny f32 matmul (MXU is otherwise idle here).
            q = q * cos + jnp.dot(q, rot, preferred_element_type=jnp.float32) * sin
            k = k * cos + jnp.dot(k, rot, preferred_element_type=jnp.float32) * sin

            q = q * inv_scale                              # q / (sqrt(hd) * coeff)
            q3 = q.reshape(batch, seq, head_dim).astype(jnp.bfloat16)
            k3 = k.reshape(batch, seq, head_dim).astype(jnp.bfloat16)
            v3 = v.reshape(batch, seq, head_dim).astype(jnp.bfloat16)

            s = jnp.einsum("bqd,bkd->bqk", q3, k3,
                           preferred_element_type=jnp.float32)          # [B, S, S]
            s = (s + bias) * coeff                         # additive mask, then * coeff
            s = s - jnp.max(s, axis=-1, keepdims=True)
            p = jnp.exp(s)
            p = p * pl.reciprocal(jnp.sum(p, axis=-1, keepdims=True), approx=True)
            ctx = jnp.einsum("bqk,bkd->bqd", p.astype(jnp.bfloat16), v3,
                             preferred_element_type=jnp.float32)        # [B, S, hd]

            part = jnp.dot(ctx.reshape(batch * seq, head_dim).astype(jnp.bfloat16),
                           wd_ref[idx], preferred_element_type=jnp.float32)
            attn_out = part if attn_out is None else attn_out + part

        # hidden = attention_input * alpha + dense(context) + bias
        hidden = attn_in * alpha + attn_out + bd_ref[layer]             # [M, H]

        # ---- post_attention_layernorm + GLU MLP -----------------------------------------
        mlp_in = layer_norm(hidden, ln2g_ref[layer], ln2b_ref[layer])
        g1 = jnp.dot(mlp_in.astype(jnp.bfloat16), w1_ref[layer],
                     preferred_element_type=jnp.float32) + b1_ref[layer]  # [M, INNER]
        # ChatGLM gelu_impl (tanh approximation)
        g1 = 0.5 * g1 * (1.0 + jnp.tanh(0.7978845608028654 * g1 * (1.0 + 0.044715 * g1 * g1)))
        mlp_out = jnp.dot(g1.astype(jnp.bfloat16), w2_ref[layer],
                          preferred_element_type=jnp.float32) + b2_ref[layer]
        h = mlp_in * alpha + mlp_out

    # final_layernorm -> single lane-contiguous store
    o_ref[...] = layer_norm(h, lnfg_ref[...], lnfb_ref[...])


def glm_forward_fused(x0, tables, packed):
    M, H = x0.shape
    kernel = functools.partial(
        _glm_forward_kernel,
        num_layers=NUM_LAYERS, num_heads=HEADS, batch=BATCH, seq=SEQ,
        head_dim=HEAD_DIM, alpha=ALPHA, eps=EPS)
    args = (
        x0, tables["cos"], tables["sin"], tables["rot"], tables["bias"],
        packed["ln1_g"], packed["ln1_b"], packed["ln2_g"], packed["ln2_b"],
        packed["wq"], packed["wk"], packed["wv"],
        packed["bq"], packed["bk"], packed["bv"],
        packed["wd"], packed["bd"],
        packed["w1"], packed["b1"], packed["w2"], packed["b2"],
        packed["lnf_g"], packed["lnf_b"],
    )
    # No grid: the whole (tiny) model is resident in VMEM and runs in one invocation.
    # TODO(synk): at production ChatGLM sizes (H=4096, INNER=16384) the linears need a tiled
    #             (tm,tn,tk) grid + VMEM-accumulator pattern; not needed at these shapes.
    return pl.pallas_call(
        kernel,
        out_shape=jax.ShapeDtypeStruct((M, H), jnp.float32),
    )(*args)


def chatglm_forward(packed, tables, input_ids):
    # word_embeddings gather stays as plain-JAX glue (single XLA op).
    emb = jnp.take(packed["wte"], input_ids, axis=0)           # [B, S, H]
    x0 = emb.reshape(BATCH * SEQ, HIDDEN).astype(jnp.float32)  # rows = b*SEQ + s
    y2d = glm_forward_fused(x0, tables, packed)                # [B*S, H]
    y = y2d.reshape(BATCH, SEQ, HIDDEN)
    return jnp.transpose(y, (1, 0, 2))                         # last_hidden_state [S, B, H]
    # TODO(synk): past_key_values / use_cache KV caching and output_attentions /
    #             output_hidden_states collections are not implemented (single full forward).


# --------------------------- host-side glue (mask / positions / rotary) ----------------------
def get_attention_mask(seq_list):
    # replicates ChatGLMModel.get_masks (built from input_ids[0], as in the reference)
    context_length = seq_list.index(BOS_ID) + 1
    n = len(seq_list)
    am = np.tril(np.ones((n, n), dtype=np.float32))
    am[:, :context_length - 1] = 1
    mask = (am < 0.5).astype(np.float32)          # 1.0 where attention is masked
    return mask                                   # [S, S]


def get_position_ids(seq_list, mask_position, gmask):
    # replicates ChatGLMModel.get_position_ids (position_encoding_2d=True)
    context_length = seq_list.index(BOS_ID) + 1
    seq_length = seq_list.index(BOS_ID)
    position_ids = np.arange(context_length, dtype=np.int64)
    if not gmask:
        position_ids[seq_length:] = mask_position
    block_position_ids = np.concatenate(
        [np.zeros(seq_length, dtype=np.int64),
         np.arange(context_length - seq_length, dtype=np.int64) + 1])
    return position_ids, block_position_ids


def build_rotary_tables(position_ids, block_position_ids):
    inv_freq = 1.0 / (10000.0 ** (np.arange(0, ROT_DIM, 2, dtype=np.float32) / ROT_DIM))

    def table(pos):
        freqs = np.einsum("i,j->ij", pos.astype(np.float32), inv_freq)   # [S, ROT_DIM/2]
        emb = np.concatenate([freqs, freqs], axis=-1)                    # [S, ROT_DIM]
        return np.cos(emb), np.sin(emb)

    c1, s1 = table(position_ids)          # first half of head dim (positions)
    c2, s2 = table(block_position_ids)    # second half of head dim (block positions)
    cos_full = np.concatenate([c1, c2], axis=-1).astype(np.float32)      # [S, HEAD_DIM]
    sin_full = np.concatenate([s1, s2], axis=-1).astype(np.float32)
    return cos_full, sin_full


def build_rotate_half_matrix():
    # rotate_half(x) == x @ R for a vector of length ROT_DIM; block-diag over the two halves.
    r = ROT_DIM
    R = np.zeros((r, r), dtype=np.float32)
    for j in range(r // 2):
        R[j + r // 2, j] = -1.0
    for j in range(r // 2, r):
        R[j - r // 2, j] = 1.0
    full = np.zeros((HEAD_DIM, HEAD_DIM), dtype=np.float32)
    full[:r, :r] = R
    full[r:, r:] = R
    return full


def build_tables(input_ids_row0):
    ids0 = [int(t) for t in np.asarray(input_ids_row0)]
    mask_token = MASK_ID if MASK_ID in ids0 else GMASK_ID
    use_gmask = MASK_ID not in ids0
    mask_position = ids0.index(mask_token)

    mask = get_attention_mask(ids0)                                 # [S, S], 1.0 = masked
    bias = (mask * -10000.0).astype(np.float32)                     # additive mask bias
    pos_ids, blk_ids = get_position_ids(ids0, mask_position, use_gmask)
    cos_full, sin_full = build_rotary_tables(pos_ids, blk_ids)      # [S, HEAD_DIM]
    cos_rows = np.tile(cos_full, (BATCH, 1)).astype(np.float32)     # rows = b*SEQ + s
    sin_rows = np.tile(sin_full, (BATCH, 1)).astype(np.float32)
    rot = build_rotate_half_matrix()
    return {"cos": jnp.asarray(cos_rows), "sin": jnp.asarray(sin_rows),
            "rot": jnp.asarray(rot), "bias": jnp.asarray(bias)}


# ------------------------------------- parameters --------------------------------------------
def init_params(key):
    """Torch-style parameterization (fused QKV, [in, out] weights)."""
    def normal(k, shape, scale=0.02):
        return (scale * jax.random.normal(k, shape)).astype(jnp.float32)

    keys = iter(jax.random.split(key, 4 + NUM_LAYERS * 8))
    params = {
        "wte": normal(next(keys), (VOCAB, HIDDEN)),
        "lnf_g": jnp.ones((HIDDEN,), jnp.float32),
        "lnf_b": jnp.zeros((HIDDEN,), jnp.float32),
        "layers": [],
    }
    for _ in range(NUM_LAYERS):
        lp = {
            "ln1_g": jnp.ones((HIDDEN,), jnp.float32),
            "ln1_b": jnp.zeros((HIDDEN,), jnp.float32),
            "wqkv": normal(next(keys), (HIDDEN, 3 * HIDDEN)),
            "bqkv": normal(next(keys), (3 * HIDDEN,)),
            "wdense": normal(next(keys), (HIDDEN, HIDDEN)),
            "bdense": normal(next(keys), (HIDDEN,)),
            "ln2_g": jnp.ones((HIDDEN,), jnp.float32),
            "ln2_b": jnp.zeros((HIDDEN,), jnp.float32),
            "w1": normal(next(keys), (HIDDEN, INNER)),
            "b1": normal(next(keys), (INNER,)),
            "w2": normal(next(keys), (INNER, HIDDEN)),
            "b2": normal(next(keys), (HIDDEN,)),
        }
        params["layers"].append(lp)
    return params


def pack_params(params):
    """Host-side re-layout of the torch-style parameters into the fused-kernel layout.

    The fused QKV weight [H, 3H] (per-head [q(16) k(16) v(16)] column groups) is split into
    per-head Wq/Wk/Wv of shape [H, head_dim] and the dense weight into per-head row blocks
    [head_dim, H], so the kernel never needs lane-dim slicing or in-kernel transposes.
    MXU operands are cast to bfloat16 (f32 accumulation in the kernel).
    """
    L, nh, hd, H, inner = NUM_LAYERS, HEADS, HEAD_DIM, HIDDEN, INNER

    def stack(fn):
        return np.stack([np.asarray(fn(lp)) for lp in params["layers"]], axis=0)

    wqkv = stack(lambda lp: lp["wqkv"]).reshape(L, H, nh, 3, hd)     # out = (head, {q,k,v}, d)
    bqkv = stack(lambda lp: lp["bqkv"]).reshape(L, nh, 3, hd)

    def w_comp(c):   # [L, H, nh, hd] -> [L*nh, H, hd]
        return np.transpose(wqkv[:, :, :, c, :], (0, 2, 1, 3)).reshape(L * nh, H, hd)

    def b_comp(c):   # [L, nh, hd] -> [L*nh, 1, hd]
        return bqkv[:, :, c, :].reshape(L * nh, 1, hd)

    wdense = stack(lambda lp: lp["wdense"]).reshape(L, nh, hd, H).reshape(L * nh, hd, H)

    bf16 = jnp.bfloat16
    packed = {
        "wte": params["wte"],
        "ln1_g": jnp.asarray(stack(lambda lp: lp["ln1_g"]).reshape(L, 1, H)),
        "ln1_b": jnp.asarray(stack(lambda lp: lp["ln1_b"]).reshape(L, 1, H)),
        "ln2_g": jnp.asarray(stack(lambda lp: lp["ln2_g"]).reshape(L, 1, H)),
        "ln2_b": jnp.asarray(stack(lambda lp: lp["ln2_b"]).reshape(L, 1, H)),
        "wq": jnp.asarray(w_comp(0), bf16),
        "wk": jnp.asarray(w_comp(1), bf16),
        "wv": jnp.asarray(w_comp(2), bf16),
        "bq": jnp.asarray(b_comp(0)),
        "bk": jnp.asarray(b_comp(1)),
        "bv": jnp.asarray(b_comp(2)),
        "wd": jnp.asarray(wdense, bf16),
        "bd": jnp.asarray(stack(lambda lp: lp["bdense"]).reshape(L, 1, H)),
        "w1": jnp.asarray(stack(lambda lp: lp["w1"]), bf16),
        "b1": jnp.asarray(stack(lambda lp: lp["b1"]).reshape(L, 1, inner)),
        "w2": jnp.asarray(stack(lambda lp: lp["w2"]), bf16),
        "b2": jnp.asarray(stack(lambda lp: lp["b2"]).reshape(L, 1, H)),
        "lnf_g": jnp.asarray(np.asarray(params["lnf_g"]).reshape(1, H)),
        "lnf_b": jnp.asarray(np.asarray(params["lnf_b"]).reshape(1, H)),
    }
    return packed


# ---------------------------------------- main ------------------------------------------------
if __name__ == "__main__":
    key = jax.random.PRNGKey(0)
    params = init_params(key)
    packed = pack_params(params)

    # input_ids: [B, S]; sequences end with [gMASK, bos] (so context_length == SEQ)
    body = jax.random.randint(jax.random.fold_in(key, 123), (BATCH, SEQ - 2), 0, 100,
                              dtype=jnp.int32)
    tail = jnp.tile(jnp.array([[GMASK_ID, BOS_ID]], dtype=jnp.int32), (BATCH, 1))
    input_ids = jnp.concatenate([body, tail], axis=1)

    # Mask / position-id / rotary tables built from input_ids[0] (exactly like the reference
    # ChatGLMModel.forward, which uses seq = input_ids[0].tolist() for the whole batch).
    tables = build_tables(input_ids[0])

    fwd = jax.jit(chatglm_forward)
    out = fwd(packed, tables, input_ids)
    out = jax.block_until_ready(out)

    assert out.shape == (SEQ, BATCH, HIDDEN), out.shape
    assert bool(jnp.isfinite(out).all())
    print("KERNEL_OK")
</pallas_src>

<mosaic_0001>
module attributes {stable_mosaic.version = 11 : i64} {
  func.func @_glm_forward_kernel(%arg0: memref<16x32xf32, #tpu.memory_space<vmem>>, %arg1: memref<16x16xf32, #tpu.memory_space<vmem>>, %arg2: memref<16x16xf32, #tpu.memory_space<vmem>>, %arg3: memref<16x16xf32, #tpu.memory_space<vmem>>, %arg4: memref<8x8xf32, #tpu.memory_space<vmem>>, %arg5: memref<2x1x32xf32, #tpu.memory_space<vmem>>, %arg6: memref<2x1x32xf32, #tpu.memory_space<vmem>>, %arg7: memref<2x1x32xf32, #tpu.memory_space<vmem>>, %arg8: memref<2x1x32xf32, #tpu.memory_space<vmem>>, %arg9: memref<4x32x16xbf16, #tpu.memory_space<vmem>>, %arg10: memref<4x32x16xbf16, #tpu.memory_space<vmem>>, %arg11: memref<4x32x16xbf16, #tpu.memory_space<vmem>>, %arg12: memref<4x1x16xf32, #tpu.memory_space<vmem>>, %arg13: memref<4x1x16xf32, #tpu.memory_space<vmem>>, %arg14: memref<4x1x16xf32, #tpu.memory_space<vmem>>, %arg15: memref<4x16x32xbf16, #tpu.memory_space<vmem>>, %arg16: memref<2x1x32xf32, #tpu.memory_space<vmem>>, %arg17: memref<2x32x128xbf16, #tpu.memory_space<vmem>>, %arg18: memref<2x1x128xf32, #tpu.memory_space<vmem>>, %arg19: memref<2x128x32xbf16, #tpu.memory_space<vmem>>, %arg20: memref<2x1x32xf32, #tpu.memory_space<vmem>>, %arg21: memref<1x32xf32, #tpu.memory_space<vmem>>, %arg22: memref<1x32xf32, #tpu.memory_space<vmem>>, %arg23: memref<16x32xf32, #tpu.memory_space<vmem>>) attributes {dimension_semantics = [], scalar_prefetch = 0 : i64, scratch_operands = 0 : i64, tpu.core_type = #tpu.core_type<tc>} {
    %c0 = arith.constant 0 : index
    %c0_0 = arith.constant 0 : index
    %0 = vector.load %arg0[%c0, %c0_0] : memref<16x32xf32, #tpu.memory_space<vmem>>, vector<16x32xf32>
    %c0_1 = arith.constant 0 : index
    %c0_2 = arith.constant 0 : index
    %1 = vector.load %arg1[%c0_1, %c0_2] : memref<16x16xf32, #tpu.memory_space<vmem>>, vector<16x16xf32>
    %c0_3 = arith.constant 0 : index
    %c0_4 = arith.constant 0 : index
    %2 = vector.load %arg2[%c0_3, %c0_4] : memref<16x16xf32, #tpu.memory_space<vmem>>, vector<16x16xf32>
    %c0_5 = arith.constant 0 : index
    %c0_6 = arith.constant 0 : index
    %3 = vector.load %arg3[%c0_5, %c0_6] : memref<16x16xf32, #tpu.memory_space<vmem>>, vector<16x16xf32>
    %c0_7 = arith.constant 0 : index
    %c0_8 = arith.constant 0 : index
    %4 = vector.load %arg4[%c0_7, %c0_8] : memref<8x8xf32, #tpu.memory_space<vmem>>, vector<8x8xf32>
    %c0_9 = arith.constant 0 : index
    %c0_10 = arith.constant 0 : index
    %c0_11 = arith.constant 0 : index
    %5 = vector.load %arg5[%c0_9, %c0_10, %c0_11] : memref<2x1x32xf32, #tpu.memory_space<vmem>>, vector<1x1x32xf32>
    %6 = vector.shape_cast %5 : vector<1x1x32xf32> to vector<1x32xf32>
    %c0_12 = arith.constant 0 : index
    %c0_13 = arith.constant 0 : index
    %c0_14 = arith.constant 0 : index
    %7 = vector.load %arg6[%c0_12, %c0_13, %c0_14] : memref<2x1x32xf32, #tpu.memory_space<vmem>>, vector<1x1x32xf32>
    %8 = vector.shape_cast %7 : vector<1x1x32xf32> to vector<1x32xf32>
    %cst = arith.constant dense<0.000000e+00> : vector<16xf32>
    %9 = vector.multi_reduction <add>, %0, %cst [1] : vector<16x32xf32> to vector<16xf32>
    %10 = vector.shape_cast %9 : vector<16xf32> to vector<16x1xf32>
    %cst_15 = arith.constant 3.200000e+01 : f32
    %11 = vector.broadcast %cst_15 : f32 to vector<16x1xf32>
    %12 = arith.divf %10, %11 : vector<16x1xf32>
    %13 = vector.broadcast %12 : vector<16x1xf32> to vector<16x32xf32>
    %14 = arith.subf %0, %13 : vector<16x32xf32>
    %15 = arith.mulf %14, %14 : vector<16x32xf32>
    %cst_16 = arith.constant dense<0.000000e+00> : vector<16xf32>
    %16 = vector.multi_reduction <add>, %15, %cst_16 [1] : vector<16x32xf32> to vector<16xf32>
    %17 = vector.shape_cast %16 : vector<16xf32> to vector<16x1xf32>
    %cst_17 = arith.constant 3.200000e+01 : f32
    %18 = vector.broadcast %cst_17 : f32 to vector<16x1xf32>
    %19 = arith.divf %17, %18 : vector<16x1xf32>
    %cst_18 = arith.constant 9.99999974E-6 : f32
    %20 = vector.broadcast %cst_18 : f32 to vector<16x1xf32>
    %21 = arith.addf %19, %20 : vector<16x1xf32>
    %22 = math.rsqrt %21 : vector<16x1xf32>
    %23 = vector.broadcast %22 : vector<16x1xf32> to vector<16x32xf32>
    %24 = arith.mulf %14, %23 : vector<16x32xf32>
    %25 = vector.broadcast %6 : vector<1x32xf32> to vector<16x32xf32>
    %26 = arith.mulf %24, %25 : vector<16x32xf32>
    %27 = vector.broadcast %8 : vector<1x32xf32> to vector<16x32xf32>
    %28 = arith.addf %26, %27 : vector<16x32xf32>
    %29 = arith.truncf %28 : vector<16x32xf32> to vector<16x32xbf16>
    %c0_19 = arith.constant 0 : index
    %c0_20 = arith.constant 0 : index
    %c0_21 = arith.constant 0 : index
    %30 = vector.load %arg9[%c0_19, %c0_20, %c0_21] : memref<4x32x16xbf16, #tpu.memory_space<vmem>>, vector<1x32x16xbf16>
    %31 = vector.shape_cast %30 : vector<1x32x16xbf16> to vector<32x16xbf16>
    %cst_22 = arith.constant dense<0.000000e+00> : vector<16x16xf32>
    %32 = tpu.matmul %29, %31, %cst_22 {dimension_numbers = #tpu.dot_dimension_numbers<[1], [0], [0], [1], [0, 0, 1, 1], [], []>} : vector<16x32xbf16>, vector<32x16xbf16>, vector<16x16xf32> -> vector<16x16xf32>
    %c0_23 = arith.constant 0 : index
    %c0_24 = arith.constant 0 : index
    %c0_25 = arith.constant 0 : index
    %33 = vector.load %arg12[%c0_23, %c0_24, %c0_25] : memref<4x1x16xf32, #tpu.memory_space<vmem>>, vector<1x1x16xf32>
    %34 = vector.shape_cast %33 : vector<1x1x16xf32> to vector<1x16xf32>
    %35 = vector.broadcast %34 : vector<1x16xf32> to vector<16x16xf32>
    %36 = arith.addf %32, %35 : vector<16x16xf32>
    %c0_26 = arith.constant 0 : index
    %c0_27 = arith.constant 0 : index
    %c0_28 = arith.constant 0 : index
    %37 = vector.load %arg10[%c0_26, %c0_27, %c0_28] : memref<4x32x16xbf16, #tpu.memory_space<vmem>>, vector<1x32x16xbf16>
    %38 = vector.shape_cast %37 : vector<1x32x16xbf16> to vector<32x16xbf16>
    %cst_29 = arith.constant dense<0.000000e+00> : vector<16x16xf32>
    %39 = tpu.matmul %29, %38, %cst_29 {dimension_numbers = #tpu.dot_dimension_numbers<[1], [0], [0], [1], [0, 0, 1, 1], [], []>} : vector<16x32xbf16>, vector<32x16xbf16>, vector<16x16xf32> -> vector<16x16xf32>
    %c0_30 = arith.constant 0 : index
    %c0_31 = arith.constant 0 : index
    %c0_32 = arith.constant 0 : index
    %40 = vector.load %arg13[%c0_30, %c0_31, %c0_32] : memref<4x1x16xf32, #tpu.memory_space<vmem>>, vector<1x1x16xf32>
    %41 = vector.shape_cast %40 : vector<1x1x16xf32> to vector<1x16xf32>
    %42 = vector.broadcast %41 : vector<1x16xf32> to vector<16x16xf32>
    %43 = arith.addf %39, %42 : vector<16x16xf32>
    %c0_33 = arith.constant 0 : index
    %c0_34 = arith.constant 0 : index
    %c0_35 = arith.constant 0 : index
    %44 = vector.load %arg11[%c0_33, %c0_34, %c0_35] : memref<4x32x16xbf16, #tpu.memory_space<vmem>>, vector<1x32x16xbf16>
    %45 = vector.shape_cast %44 : vector<1x32x16xbf16> to vector<32x16xbf16>
    %cst_36 = arith.constant dense<0.000000e+00> : vector<16x16xf32>
    %46 = tpu.matmul %29, %45, %cst_36 {dimension_numbers = #tpu.dot_dimension_numbers<[1], [0], [0], [1], [0, 0, 1, 1], [], []>} : vector<16x32xbf16>, vector<32x16xbf16>, vector<16x16xf32> -> vector<16x16xf32>
    %c0_37 = arith.constant 0 : index
    %c0_38 = arith.constant 0 : index
    %c0_39 = arith.constant 0 : index
    %47 = vector.load %arg14[%c0_37, %c0_38, %c0_39] : memref<4x1x16xf32, #tpu.memory_space<vmem>>, vector<1x1x16xf32>
    %48 = vector.shape_cast %47 : vector<1x1x16xf32> to vector<1x16xf32>
    %49 = vector.broadcast %48 : vector<1x16xf32> to vector<16x16xf32>
    %50 = arith.addf %46, %49 : vector<16x16xf32>
    %51 = arith.mulf %36, %1 : vector<16x16xf32>
    %cst_40 = arith.constant dense<0.000000e+00> : vector<16x16xf32>
    %52 = tpu.matmul %36, %3, %cst_40 {dimension_numbers = #tpu.dot_dimension_numbers<[1], [0], [0], [1], [0, 0, 1, 1], [], []>} : vector<16x16xf32>, vector<16x16xf32>, vector<16x16xf32> -> vector<16x16xf32>
    %53 = arith.mulf %52, %2 : vector<16x16xf32>
    %54 = arith.addf %51, %53 : vector<16x16xf32>
    %55 = arith.mulf %43, %1 : vector<16x16xf32>
    %cst_41 = arith.constant dense<0.000000e+00> : vector<16x16xf32>
    %56 = tpu.matmul %43, %3, %cst_41 {dimension_numbers = #tpu.dot_dimension_numbers<[1], [0], [0], [1], [0, 0, 1, 1], [], []>} : vector<16x16xf32>, vector<16x16xf32>, vector<16x16xf32> -> vector<16x16xf32>
    %57 = arith.mulf %56, %2 : vector<16x16xf32>
    %58 = arith.addf %55, %57 : vector<16x16xf32>
    %cst_42 = arith.constant 2.500000e-01 : f32
    %59 = vector.broadcast %cst_42 : f32 to vector<16x16xf32>
    %60 = arith.mulf %54, %59 : vector<16x16xf32>
    %61 = vector.shape_cast %60 : vector<16x16xf32> to vector<2x8x16xf32>
    %62 = arith.truncf %61 : vector<2x8x16xf32> to vector<2x8x16xbf16>
    %63 = vector.shape_cast %58 : vector<16x16xf32> to vector<2x8x16xf32>
    %64 = arith.truncf %63 : vector<2x8x16xf32> to vector<2x8x16xbf16>
    %65 = vector.shape_cast %50 : vector<16x16xf32> to vector<2x8x16xf32>
    %66 = arith.truncf %65 : vector<2x8x16xf32> to vector<2x8x16xbf16>
    "tpu.trace_start"() <{level = 10 : i32, message = "bqd,bkd->bqk"}> : () -> ()
    %cst_43 = arith.constant dense<0.000000e+00> : vector<2x8x8xf32>
    %67 = tpu.matmul %62, %64, %cst_43 {dimension_numbers = #tpu.dot_dimension_numbers<[2], [2], [1], [1], [0, 0, 0, 1, 1, 1], [0], [0]>} : vector<2x8x16xbf16>, vector<2x8x16xbf16>, vector<2x8x8xf32> -> vector<2x8x8xf32>
    "tpu.trace_stop"() : () -> ()
    %68 = vector.shape_cast %4 : vector<8x8xf32> to vector<1x8x8xf32>
    %69 = vector.broadcast %68 : vector<1x8x8xf32> to vector<2x8x8xf32>
    %70 = arith.addf %67, %69 : vector<2x8x8xf32>
    %cst_44 = arith.constant 1.000000e+00 : f32
    %71 = vector.broadcast %cst_44 : f32 to vector<2x8x8xf32>
    %72 = arith.mulf %70, %71 : vector<2x8x8xf32>
    %cst_45 = arith.constant dense<0xFF800000> : vector<2x8xf32>
    %73 = vector.multi_reduction <maximumf>, %72, %cst_45 [2] : vector<2x8x8xf32> to vector<2x8xf32>
    %74 = vector.shape_cast %73 : vector<2x8xf32> to vector<2x8x1xf32>
    %75 = vector.broadcast %74 : vector<2x8x1xf32> to vector<2x8x8xf32>
    %76 = arith.subf %72, %75 : vector<2x8x8xf32>
    %77 = math.exp %76 : vector<2x8x8xf32>
    %cst_46 = arith.constant dense<0.000000e+00> : vector<2x8xf32>
    %78 = vector.multi_reduction <add>, %77, %cst_46 [2] : vector<2x8x8xf32> to vector<2x8xf32>
    %79 = vector.shape_cast %78 : vector<2x8xf32> to vector<2x8x1xf32>
    %80 = tpu.reciprocal %79 {approx = true} : vector<2x8x1xf32> -> vector<2x8x1xf32>
    %81 = vector.broadcast %80 : vector<2x8x1xf32> to vector<2x8x8xf32>
    %82 = arith.mulf %77, %81 : vector<2x8x8xf32>
    %83 = arith.truncf %82 : vector<2x8x8xf32> to vector<2x8x8xbf16>
    "tpu.trace_start"() <{level = 10 : i32, message = "bqk,bkd->bqd"}> : () -> ()
    %cst_47 = arith.constant dense<0.000000e+00> : vector<2x8x16xf32>
    %84 = tpu.matmul %83, %66, %cst_47 {dimension_numbers = #tpu.dot_dimension_numbers<[2], [1], [1], [2], [0, 0, 0, 1, 1, 2], [0], [0]>} : vector<2x8x8xbf16>, vector<2x8x16xbf16>, vector<2x8x16xf32> -> vector<2x8x16xf32>
    "tpu.trace_stop"() : () -> ()
    %85 = vector.shape_cast %84 : vector<2x8x16xf32> to vector<16x16xf32>
    %86 = arith.truncf %85 : vector<16x16xf32> to vector<16x16xbf16>
    %c0_48 = arith.constant 0 : index
    %c0_49 = arith.constant 0 : index
    %c0_50 = arith.constant 0 : index
    %87 = vector.load %arg15[%c0_48, %c0_49, %c0_50] : memref<4x16x32xbf16, #tpu.memory_space<vmem>>, vector<1x16x32xbf16>
    %88 = vector.shape_cast %87 : vector<1x16x32xbf16> to vector<16x32xbf16>
    %cst_51 = arith.constant dense<0.000000e+00> : vector<16x32xf32>
    %89 = tpu.matmul %86, %88, %cst_51 {dimension_numbers = #tpu.dot_dimension_numbers<[1], [0], [0], [1], [0, 0, 1, 1], [], []>} : vector<16x16xbf16>, vector<16x32xbf16>, vector<16x32xf32> -> vector<16x32xf32>
    %c1 = arith.constant 1 : index
    %c0_52 = arith.constant 0 : index
    %c0_53 = arith.constant 0 : index
    %90 = vector.load %arg9[%c1, %c0_52, %c0_53] : memref<4x32x16xbf16, #tpu.memory_space<vmem>>, vector<1x32x16xbf16>
    %91 = vector.shape_cast %90 : vector<1x32x16xbf16> to vector<32x16xbf16>
    %cst_54 = arith.constant dense<0.000000e+00> : vector<16x16xf32>
    %92 = tpu.matmul %29, %91, %cst_54 {dimension_numbers = #tpu.dot_dimension_numbers<[1], [0], [0], [1], [0, 0, 1, 1], [], []>} : vector<16x32xbf16>, vector<32x16xbf16>, vector<16x16xf32> -> vector<16x16xf32>
    %c1_55 = arith.constant 1 : index
    %c0_56 = arith.constant 0 : index
    %c0_57 = arith.constant 0 : index
    %93 = vector.load %arg12[%c1_55, %c0_56, %c0_57] : memref<4x1x16xf32, #tpu.memory_space<vmem>>, vector<1x1x16xf32>
    %94 = vector.shape_cast %93 : vector<1x1x16xf32> to vector<1x16xf32>
    %95 = vector.broadcast %94 : vector<1x16xf32> to vector<16x16xf32>
    %96 = arith.addf %92, %95 : vector<16x16xf32>
    %c1_58 = arith.constant 1 : index
    %c0_59 = arith.constant 0 : index
    %c0_60 = arith.constant 0 : index
    %97 = vector.load %arg10[%c1_58, %c0_59, %c0_60] : memref<4x32x16xbf16, #tpu.memory_space<vmem>>, vector<1x32x16xbf16>
    %98 = vector.shape_cast %97 : vector<1x32x16xbf16> to vector<32x16xbf16>
    %cst_61 = arith.constant dense<0.000000e+00> : vector<16x16xf32>
    %99 = tpu.matmul %29, %98, %cst_61 {dimension_numbers = #tpu.dot_dimension_numbers<[1], [0], [0], [1], [0, 0, 1, 1], [], []>} : vector<16x32xbf16>, vector<32x16xbf16>, vector<16x16xf32> -> vector<16x16xf32>
    %c1_62 = arith.constant 1 : index
    %c0_63 = arith.constant 0 : index
    %c0_64 = arith.constant 0 : index
    %100 = vector.load %arg13[%c1_62, %c0_63, %c0_64] : memref<4x1x16xf32, #tpu.memory_space<vmem>>, vector<1x1x16xf32>
    %101 = vector.shape_cast %100 : vector<1x1x16xf32> to vector<1x16xf32>
    %102 = vector.broadcast %101 : vector<1x16xf32> to vector<16x16xf32>
    %103 = arith.addf %99, %102 : vector<16x16xf32>
    %c1_65 = arith.constant 1 : index
    %c0_66 = arith.constant 0 : index
    %c0_67 = arith.constant 0 : index
    %104 = vector.load %arg11[%c1_65, %c0_66, %c0_67] : memref<4x32x16xbf16, #tpu.memory_space<vmem>>, vector<1x32x16xbf16>
    %105 = vector.shape_cast %104 : vector<1x32x16xbf16> to vector<32x16xbf16>
    %cst_68 = arith.constant dense<0.000000e+00> : vector<16x16xf32>
    %106 = tpu.matmul %29, %105, %cst_68 {dimension_numbers = #tpu.dot_dimension_numbers<[1], [0], [0], [1], [0, 0, 1, 1], [], []>} : vector<16x32xbf16>, vector<32x16xbf16>, vector<16x16xf32> -> vector<16x16xf32>
    %c1_69 = arith.constant 1 : index
    %c0_70 = arith.constant 0 : index
    %c0_71 = arith.constant 0 : index
    %107 = vector.load %arg14[%c1_69, %c0_70, %c0_71] : memref<4x1x16xf32, #tpu.memory_space<vmem>>, vector<1x1x16xf32>
    %108 = vector.shape_cast %107 : vector<1x1x16xf32> to vector<1x16xf32>
    %109 = vector.broadcast %108 : vector<1x16xf32> to vector<16x16xf32>
    %110 = arith.addf %106, %109 : vector<16x16xf32>
    %111 = arith.mulf %96, %1 : vector<16x16xf32>
    %cst_72 = arith.constant dense<0.000000e+00> : vector<16x16xf32>
    %112 = tpu.matmul %96, %3, %cst_72 {dimension_numbers = #tpu.dot_dimension_numbers<[1], [0], [0], [1], [0, 0, 1, 1], [], []>} : vector<16x16xf32>, vector<16x16xf32>, vector<16x16xf32> -> vector<16x16xf32>
    %113 = arith.mulf %112, %2 : vector<16x16xf32>
    %114 = arith.addf %111, %113 : vector<16x16xf32>
    %115 = arith.mulf %103, %1 : vector<16x16xf32>
    %cst_73 = arith.constant dense<0.000000e+00> : vector<16x16xf32>
    %116 = tpu.matmul %103, %3, %cst_73 {dimension_numbers = #tpu.dot_dimension_numbers<[1], [0], [0], [1], [0, 0, 1, 1], [], []>} : vector<16x16xf32>, vector<16x16xf32>, vector<16x16xf32> -> vector<16x16xf32>
    %117 = arith.mulf %116, %2 : vector<16x16xf32>
    %118 = arith.addf %115, %117 : vector<16x16xf32>
    %cst_74 = arith.constant 2.500000e-01 : f32
    %119 = vector.broadcast %cst_74 : f32 to vector<16x16xf32>
    %120 = arith.mulf %114, %119 : vector<16x16xf32>
    %121 = vector.shape_cast %120 : vector<16x16xf32> to vector<2x8x16xf32>
    %122 = arith.truncf %121 : vector<2x8x16xf32> to vector<2x8x16xbf16>
    %123 = vector.shape_cast %118 : vector<16x16xf32> to vector<2x8x16xf32>
    %124 = arith.truncf %123 : vector<2x8x16xf32> to vector<2x8x16xbf16>
    %125 = vector.shape_cast %110 : vector<16x16xf32> to vector<2x8x16xf32>
    %126 = arith.truncf %125 : vector<2x8x16xf32> to vector<2x8x16xbf16>
    "tpu.trace_start"() <{level = 10 : i32, message = "bqd,bkd->bqk"}> : () -> ()
    %cst_75 = arith.constant dense<0.000000e+00> : vector<2x8x8xf32>
    %127 = tpu.matmul %122, %124, %cst_75 {dimension_numbers = #tpu.dot_dimension_numbers<[2], [2], [1], [1], [0, 0, 0, 1, 1, 1], [0], [0]>} : vector<2x8x16xbf16>, vector<2x8x16xbf16>, vector<2x8x8xf32> -> vector<2x8x8xf32>
    "tpu.trace_stop"() : () -> ()
    %128 = vector.shape_cast %4 : vector<8x8xf32> to vector<1x8x8xf32>
    %129 = vector.broadcast %128 : vector<1x8x8xf32> to vector<2x8x8xf32>
    %130 = arith.addf %127, %129 : vector<2x8x8xf32>
    %cst_76 = arith.constant 1.000000e+00 : f32
    %131 = vector.broadcast %cst_76 : f32 to vector<2x8x8xf32>
    %132 = arith.mulf %130, %131 : vector<2x8x8xf32>
    %cst_77 = arith.constant dense<0xFF800000> : vector<2x8xf32>
    %133 = vector.multi_reduction <maximumf>, %132, %cst_77 [2] : vector<2x8x8xf32> to vector<2x8xf32>
    %134 = vector.shape_cast %133 : vector<2x8xf32> to vector<2x8x1xf32>
    %135 = vector.broadcast %134 : vector<2x8x1xf32> to vector<2x8x8xf32>
    %136 = arith.subf %132, %135 : vector<2x8x8xf32>
    %137 = math.exp %136 : vector<2x8x8xf32>
    %cst_78 = arith.constant dense<0.000000e+00> : vector<2x8xf32>
    %138 = vector.multi_reduction <add>, %137, %cst_78 [2] : vector<2x8x8xf32> to vector<2x8xf32>
    %139 = vector.shape_cast %138 : vector<2x8xf32> to vector<2x8x1xf32>
    %140 = tpu.reciprocal %139 {approx = true} : vector<2x8x1xf32> -> vector<2x8x1xf32>
    %141 = vector.broadcast %140 : vector<2x8x1xf32> to vector<2x8x8xf32>
    %142 = arith.mulf %137, %141 : vector<2x8x8xf32>
    %143 = arith.truncf %142 : vector<2x8x8xf32> to vector<2x8x8xbf16>
    "tpu.trace_start"() <{level = 10 : i32, message = "bqk,bkd->bqd"}> : () -> ()
    %cst_79 = arith.constant dense<0.000000e+00> : vector<2x8x16xf32>
    %144 = tpu.matmul %143, %126, %cst_79 {dimension_numbers = #tpu.dot_dimension_numbers<[2], [1], [1], [2], [0, 0, 0, 1, 1, 2], [0], [0]>} : vector<2x8x8xbf16>, vector<2x8x16xbf16>, vector<2x8x16xf32> -> vector<2x8x16xf32>
    "tpu.trace_stop"() : () -> ()
    %145 = vector.shape_cast %144 : vector<2x8x16xf32> to vector<16x16xf32>
    %146 = arith.truncf %145 : vector<16x16xf32> to vector<16x16xbf16>
    %c1_80 = arith.constant 1 : index
    %c0_81 = arith.constant 0 : index
    %c0_82 = arith.constant 0 : index
    %147 = vector.load %arg15[%c1_80, %c0_81, %c0_82] : memref<4x16x32xbf16, #tpu.memory_space<vmem>>, vector<1x16x32xbf16>
    %148 = vector.shape_cast %147 : vector<1x16x32xbf16> to vector<16x32xbf16>
    %cst_83 = arith.constant dense<0.000000e+00> : vector<16x32xf32>
    %149 = tpu.matmul %146, %148, %cst_83 {dimension_numbers = #tpu.dot_dimension_numbers<[1], [0], [0], [1], [0, 0, 1, 1], [], []>} : vector<16x16xbf16>, vector<16x32xbf16>, vector<16x32xf32> -> vector<16x32xf32>
    %150 = arith.addf %89, %149 : vector<16x32xf32>
    %cst_84 = arith.constant 2.000000e+00 : f32
    %151 = vector.broadcast %cst_84 : f32 to vector<16x32xf32>
    %152 = arith.mulf %28, %151 : vector<16x32xf32>
    %153 = arith.addf %152, %150 : vector<16x32xf32>
    %c0_85 = arith.constant 0 : index
    %c0_86 = arith.constant 0 : index
    %c0_87 = arith.constant 0 : index
    %154 = vector.load %arg16[%c0_85, %c0_86, %c0_87] : memref<2x1x32xf32, #tpu.memory_space<vmem>>, vector<1x1x32xf32>
    %155 = vector.shape_cast %154 : vector<1x1x32xf32> to vector<1x32xf32>
    %156 = vector.broadcast %155 : vector<1x32xf32> to vector<16x32xf32>
    %157 = arith.addf %153, %156 : vector<16x32xf32>
    %c0_88 = arith.constant 0 : index
    %c0_89 = arith.constant 0 : index
    %c0_90 = arith.constant 0 : index
    %158 = vector.load %arg7[%c0_88, %c0_89, %c0_90] : memref<2x1x32xf32, #tpu.memory_space<vmem>>, vector<1x1x32xf32>
    %159 = vector.shape_cast %158 : vector<1x1x32xf32> to vector<1x32xf32>
    %c0_91 = arith.constant 0 : index
    %c0_92 = arith.constant 0 : index
    %c0_93 = arith.constant 0 : index
    %160 = vector.load %arg8[%c0_91, %c0_92, %c0_93] : memref<2x1x32xf32, #tpu.memory_space<vmem>>, vector<1x1x32xf32>
    %161 = vector.shape_cast %160 : vector<1x1x32xf32> to vector<1x32xf32>
    %cst_94 = arith.constant dense<0.000000e+00> : vector<16xf32>
    %162 = vector.multi_reduction <add>, %157, %cst_94 [1] : vector<16x32xf32> to vector<16xf32>
    %163 = vector.shape_cast %162 : vector<16xf32> to vector<16x1xf32>
    %cst_95 = arith.constant 3.200000e+01 : f32
    %164 = vector.broadcast %cst_95 : f32 to vector<16x1xf32>
    %165 = arith.divf %163, %164 : vector<16x1xf32>
    %166 = vector.broadcast %165 : vector<16x1xf32> to vector<16x32xf32>
    %167 = arith.subf %157, %166 : vector<16x32xf32>
    %168 = arith.mulf %167, %167 : vector<16x32xf32>
    %cst_96 = arith.constant dense<0.000000e+00> : vector<16xf32>
    %169 = vector.multi_reduction <add>, %168, %cst_96 [1] : vector<16x32xf32> to vector<16xf32>
    %170 = vector.shape_cast %169 : vector<16xf32> to vector<16x1xf32>
    %cst_97 = arith.constant 3.200000e+01 : f32
    %171 = vector.broadcast %cst_97 : f32 to vector<16x1xf32>
    %172 = arith.divf %170, %171 : vector<16x1xf32>
    %cst_98 = arith.constant 9.99999974E-6 : f32
    %173 = vector.broadcast %cst_98 : f32 to vector<16x1xf32>
    %174 = arith.addf %172, %173 : vector<16x1xf32>
    %175 = math.rsqrt %174 : vector<16x1xf32>
    %176 = vector.broadcast %175 : vector<16x1xf32> to vector<16x32xf32>
    %177 = arith.mulf %167, %176 : vector<16x32xf32>
    %178 = vector.broadcast %159 : vector<1x32xf32> to vector<16x32xf32>
    %179 = arith.mulf %177, %178 : vector<16x32xf32>
    %180 = vector.broadcast %161 : vector<1x32xf32> to vector<16x32xf32>
    %181 = arith.addf %179, %180 : vector<16x32xf32>
    %182 = arith.truncf %181 : vector<16x32xf32> to vector<16x32xbf16>
    %c0_99 = arith.constant 0 : index
    %c0_100 = arith.constant 0 : index
    %c0_101 = arith.constant 0 : index
    %183 = vector.load %arg17[%c0_99, %c0_100, %c0_101] : memref<2x32x128xbf16, #tpu.memory_space<vmem>>, vector<1x32x128xbf16>
    %184 = vector.shape_cast %183 : vector<1x32x128xbf16> to vector<32x128xbf16>
    %cst_102 = arith.constant dense<0.000000e+00> : vector<16x128xf32>
    %185 = tpu.matmul %182, %184, %cst_102 {dimension_numbers = #tpu.dot_dimension_numbers<[1], [0], [0], [1], [0, 0, 1, 1], [], []>} : vector<16x32xbf16>, vector<32x128xbf16>, vector<16x128xf32> -> vector<16x128xf32>
    %c0_103 = arith.constant 0 : index
    %c0_104 = arith.constant 0 : index
    %c0_105 = arith.constant 0 : index
    %186 = vector.load %arg18[%c0_103, %c0_104, %c0_105] : memref<2x1x128xf32, #tpu.memory_space<vmem>>, vector<1x1x128xf32>
    %187 = vector.shape_cast %186 : vector<1x1x128xf32> to vector<1x128xf32>
    %188 = vector.broadcast %187 : vector<1x128xf32> to vector<16x128xf32>
    %189 = arith.addf %185, %188 : vector<16x128xf32>
    %cst_106 = arith.constant 5.000000e-01 : f32
    %190 = vector.broadcast %cst_106 : f32 to vector<16x128xf32>
    %191 = arith.mulf %190, %189 : vector<16x128xf32>
    %cst_107 = arith.constant 0.797884583 : f32
    %192 = vector.broadcast %cst_107 : f32 to vector<16x128xf32>
    %193 = arith.mulf %192, %189 : vector<16x128xf32>
    %cst_108 = arith.constant 4.471500e-02 : f32
    %194 = vector.broadcast %cst_108 : f32 to vector<16x128xf32>
    %195 = arith.mulf %194, %189 : vector<16x128xf32>
    %196 = arith.mulf %195, %189 : vector<16x128xf32>
    %cst_109 = arith.constant 1.000000e+00 : f32
    %197 = vector.broadcast %cst_109 : f32 to vector<16x128xf32>
    %198 = arith.addf %197, %196 : vector<16x128xf32>
    %199 = arith.mulf %193, %198 : vector<16x128xf32>
    %200 = math.tanh %199 : vector<16x128xf32>
    %cst_110 = arith.constant 1.000000e+00 : f32
    %201 = vector.broadcast %cst_110 : f32 to vector<16x128xf32>
    %202 = arith.addf %201, %200 : vector<16x128xf32>
    %203 = arith.mulf %191, %202 : vector<16x128xf32>
    %204 = arith.truncf %203 : vector<16x128xf32> to vector<16x128xbf16>
    %c0_111 = arith.constant 0 : index
    %c0_112 = arith.constant 0 : index
    %c0_113 = arith.constant 0 : index
    %205 = vector.load %arg19[%c0_111, %c0_112, %c0_113] : memref<2x128x32xbf16, #tpu.memory_space<vmem>>, vector<1x128x32xbf16>
    %206 = vector.shape_cast %205 : vector<1x128x32xbf16> to vector<128x32xbf16>
    %cst_114 = arith.constant dense<0.000000e+00> : vector<16x32xf32>
    %207 = tpu.matmul %204, %206, %cst_114 {dimension_numbers = #tpu.dot_dimension_numbers<[1], [0], [0], [1], [0, 0, 1, 1], [], []>} : vector<16x128xbf16>, vector<128x32xbf16>, vector<16x32xf32> -> vector<16x32xf32>
    %c0_115 = arith.constant 0 : index
    %c0_116 = arith.constant 0 : index
    %c0_117 = arith.constant 0 : index
    %208 = vector.load %arg20[%c0_115, %c0_116, %c0_117] : memref<2x1x32xf32, #tpu.memory_space<vmem>>, vector<1x1x32xf32>
    %209 = vector.shape_cast %208 : vector<1x1x32xf32> to vector<1x32xf32>
    %210 = vector.broadcast %209 : vector<1x32xf32> to vector<16x32xf32>
    %211 = arith.addf %207, %210 : vector<16x32xf32>
    %cst_118 = arith.constant 2.000000e+00 : f32
    %212 = vector.broadcast %cst_118 : f32 to vector<16x32xf32>
    %213 = arith.mulf %181, %212 : vector<16x32xf32>
    %214 = arith.addf %213, %211 : vector<16x32xf32>
    %c1_119 = arith.constant 1 : index
    %c0_120 = arith.constant 0 : index
    %c0_121 = arith.constant 0 : index
    %215 = vector.load %arg5[%c1_119, %c0_120, %c0_121] : memref<2x1x32xf32, #tpu.memory_space<vmem>>, vector<1x1x32xf32>
    %216 = vector.shape_cast %215 : vector<1x1x32xf32> to vector<1x32xf32>
    %c1_122 = arith.constant 1 : index
    %c0_123 = arith.constant 0 : index
    %c0_124 = arith.constant 0 : index
    %217 = vector.load %arg6[%c1_122, %c0_123, %c0_124] : memref<2x1x32xf32, #tpu.memory_space<vmem>>, vector<1x1x32xf32>
    %218 = vector.shape_cast %217 : vector<1x1x32xf32> to vector<1x32xf32>
    %cst_125 = arith.constant dense<0.000000e+00> : vector<16xf32>
    %219 = vector.multi_reduction <add>, %214, %cst_125 [1] : vector<16x32xf32> to vector<16xf32>
    %220 = vector.shape_cast %219 : vector<16xf32> to vector<16x1xf32>
    %cst_126 = arith.constant 3.200000e+01 : f32
    %221 = vector.broadcast %cst_126 : f32 to vector<16x1xf32>
    %222 = arith.divf %220, %221 : vector<16x1xf32>
    %223 = vector.broadcast %222 : vector<16x1xf32> to vector<16x32xf32>
    %224 = arith.subf %214, %223 : vector<16x32xf32>
    %225 = arith.mulf %224, %224 : vector<16x32xf32>
    %cst_127 = arith.constant dense<0.000000e+00> : vector<16xf32>
    %226 = vector.multi_reduction <add>, %225, %cst_127 [1] : vector<16x32xf32> to vector<16xf32>
    %227 = vector.shape_cast %226 : vector<16xf32> to vector<16x1xf32>
    %cst_128 = arith.constant 3.200000e+01 : f32
    %228 = vector.broadcast %cst_128 : f32 to vector<16x1xf32>
    %229 = arith.divf %227, %228 : vector<16x1xf32>
    %cst_129 = arith.constant 9.99999974E-6 : f32
    %230 = vector.broadcast %cst_129 : f32 to vector<16x1xf32>
    %231 = arith.addf %229, %230 : vector<16x1xf32>
    %232 = math.rsqrt %231 : vector<16x1xf32>
    %233 = vector.broadcast %232 : vector<16x1xf32> to vector<16x32xf32>
    %234 = arith.mulf %224, %233 : vector<16x32xf32>
    %235 = vector.broadcast %216 : vector<1x32xf32> to vector<16x32xf32>
    %236 = arith.mulf %234, %235 : vector<16x32xf32>
    %237 = vector.broadcast %218 : vector<1x32xf32> to vector<16x32xf32>
    %238 = arith.addf %236, %237 : vector<16x32xf32>
    %239 = arith.truncf %238 : vector<16x32xf32> to vector<16x32xbf16>
    %c2 = arith.constant 2 : index
    %c0_130 = arith.constant 0 : index
    %c0_131 = arith.constant 0 : index
    %240 = vector.load %arg9[%c2, %c0_130, %c0_131] : memref<4x32x16xbf16, #tpu.memory_space<vmem>>, vector<1x32x16xbf16>
    %241 = vector.shape_cast %240 : vector<1x32x16xbf16> to vector<32x16xbf16>
    %cst_132 = arith.constant dense<0.000000e+00> : vector<16x16xf32>
    %242 = tpu.matmul %239, %241, %cst_132 {dimension_numbers = #tpu.dot_dimension_numbers<[1], [0], [0], [1], [0, 0, 1, 1], [], []>} : vector<16x32xbf16>, vector<32x16xbf16>, vector<16x16xf32> -> vector<16x16xf32>
    %c2_133 = arith.constant 2 : index
    %c0_134 = arith.constant 0 : index
    %c0_135 = arith.constant 0 : index
    %243 = vector.load %arg12[%c2_133, %c0_134, %c0_135] : memref<4x1x16xf32, #tpu.memory_space<vmem>>, vector<1x1x16xf32>
    %244 = vector.shape_cast %243 : vector<1x1x16xf32> to vector<1x16xf32>
    %245 = vector.broadcast %244 : vector<1x16xf32> to vector<16x16xf32>
    %246 = arith.addf %242, %245 : vector<16x16xf32>
    %c2_136 = arith.constant 2 : index
    %c0_137 = arith.constant 0 : index
    %c0_138 = arith.constant 0 : index
    %247 = vector.load %arg10[%c2_136, %c0_137, %c0_138] : memref<4x32x16xbf16, #tpu.memory_space<vmem>>, vector<1x32x16xbf16>
    %248 = vector.shape_cast %247 : vector<1x32x16xbf16> to vector<32x16xbf16>
    %cst_139 = arith.constant dense<0.000000e+00> : vector<16x16xf32>
    %249 = tpu.matmul %239, %248, %cst_139 {dimension_numbers = #tpu.dot_dimension_numbers<[1], [0], [0], [1], [0, 0, 1, 1], [], []>} : vector<16x32xbf16>, vector<32x16xbf16>, vector<16x16xf32> -> vector<16x16xf32>
    %c2_140 = arith.constant 2 : index
    %c0_141 = arith.constant 0 : index
    %c0_142 = arith.constant 0 : index
    %250 = vector.load %arg13[%c2_140, %c0_141, %c0_142] : memref<4x1x16xf32, #tpu.memory_space<vmem>>, vector<1x1x16xf32>
    %251 = vector.shape_cast %250 : vector<1x1x16xf32> to vector<1x16xf32>
    %252 = vector.broadcast %251 : vector<1x16xf32> to vector<16x16xf32>
    %253 = arith.addf %249, %252 : vector<16x16xf32>
    %c2_143 = arith.constant 2 : index
    %c0_144 = arith.constant 0 : index
    %c0_145 = arith.constant 0 : index
    %254 = vector.load %arg11[%c2_143, %c0_144, %c0_145] : memref<4x32x16xbf16, #tpu.memory_space<vmem>>, vector<1x32x16xbf16>
    %255 = vector.shape_cast %254 : vector<1x32x16xbf16> to vector<32x16xbf16>
    %cst_146 = arith.constant dense<0.000000e+00> : vector<16x16xf32>
    %256 = tpu.matmul %239, %255, %cst_146 {dimension_numbers = #tpu.dot_dimension_numbers<[1], [0], [0], [1], [0, 0, 1, 1], [], []>} : vector<16x32xbf16>, vector<32x16xbf16>, vector<16x16xf32> -> vector<16x16xf32>
    %c2_147 = arith.constant 2 : index
    %c0_148 = arith.constant 0 : index
    %c0_149 = arith.constant 0 : index
    %257 = vector.load %arg14[%c2_147, %c0_148, %c0_149] : memref<4x1x16xf32, #tpu.memory_space<vmem>>, vector<1x1x16xf32>
    %258 = vector.shape_cast %257 : vector<1x1x16xf32> to vector<1x16xf32>
    %259 = vector.broadcast %258 : vector<1x16xf32> to vector<16x16xf32>
    %260 = arith.addf %256, %259 : vector<16x16xf32>
    %261 = arith.mulf %246, %1 : vector<16x16xf32>
    %cst_150 = arith.constant dense<0.000000e+00> : vector<16x16xf32>
    %262 = tpu.matmul %246, %3, %cst_150 {dimension_numbers = #tpu.dot_dimension_numbers<[1], [0], [0], [1], [0, 0, 1, 1], [], []>} : vector<16x16xf32>, vector<16x16xf32>, vector<16x16xf32> -> vector<16x16xf32>
    %263 = arith.mulf %262, %2 : vector<16x16xf32>
    %264 = arith.addf %261, %263 : vector<16x16xf32>
    %265 = arith.mulf %253, %1 : vector<16x16xf32>
    %cst_151 = arith.constant dense<0.000000e+00> : vector<16x16xf32>
    %266 = tpu.matmul %253, %3, %cst_151 {dimension_numbers = #tpu.dot_dimension_numbers<[1], [0], [0], [1], [0, 0, 1, 1], [], []>} : vector<16x16xf32>, vector<16x16xf32>, vector<16x16xf32> -> vector<16x16xf32>
    %267 = arith.mulf %266, %2 : vector<16x16xf32>
    %268 = arith.addf %265, %267 : vector<16x16xf32>
    %cst_152 = arith.constant 1.250000e-01 : f32
    %269 = vector.broadcast %cst_152 : f32 to vector<16x16xf32>
    %270 = arith.mulf %264, %269 : vector<16x16xf32>
    %271 = vector.shape_cast %270 : vector<16x16xf32> to vector<2x8x16xf32>
    %272 = arith.truncf %271 : vector<2x8x16xf32> to vector<2x8x16xbf16>
    %273 = vector.shape_cast %268 : vector<16x16xf32> to vector<2x8x16xf32>
    %274 = arith.truncf %273 : vector<2x8x16xf32> to vector<2x8x16xbf16>
    %275 = vector.shape_cast %260 : vector<16x16xf32> to vector<2x8x16xf32>
    %276 = arith.truncf %275 : vector<2x8x16xf32> to vector<2x8x16xbf16>
    "tpu.trace_start"() <{level = 10 : i32, message = "bqd,bkd->bqk"}> : () -> ()
    %cst_153 = arith.constant dense<0.000000e+00> : vector<2x8x8xf32>
    %277 = tpu.matmul %272, %274, %cst_153 {dimension_numbers = #tpu.dot_dimension_numbers<[2], [2], [1], [1], [0, 0, 0, 1, 1, 1], [0], [0]>} : vector<2x8x16xbf16>, vector<2x8x16xbf16>, vector<2x8x8xf32> -> vector<2x8x8xf32>
    "tpu.trace_stop"() : () -> ()
    %278 = vector.shape_cast %4 : vector<8x8xf32> to vector<1x8x8xf32>
    %279 = vector.broadcast %278 : vector<1x8x8xf32> to vector<2x8x8xf32>
    %280 = arith.addf %277, %279 : vector<2x8x8xf32>
    %cst_154 = arith.constant 2.000000e+00 : f32
    %281 = vector.broadcast %cst_154 : f32 to vector<2x8x8xf32>
    %282 = arith.mulf %280, %281 : vector<2x8x8xf32>
    %cst_155 = arith.constant dense<0xFF800000> : vector<2x8xf32>
    %283 = vector.multi_reduction <maximumf>, %282, %cst_155 [2] : vector<2x8x8xf32> to vector<2x8xf32>
    %284 = vector.shape_cast %283 : vector<2x8xf32> to vector<2x8x1xf32>
    %285 = vector.broadcast %284 : vector<2x8x1xf32> to vector<2x8x8xf32>
    %286 = arith.subf %282, %285 : vector<2x8x8xf32>
    %287 = math.exp %286 : vector<2x8x8xf32>
    %cst_156 = arith.constant dense<0.000000e+00> : vector<2x8xf32>
    %288 = vector.multi_reduction <add>, %287, %cst_156 [2] : vector<2x8x8xf32> to vector<2x8xf32>
    %289 = vector.shape_cast %288 : vector<2x8xf32> to vector<2x8x1xf32>
    %290 = tpu.reciprocal %289 {approx = true} : vector<2x8x1xf32> -> vector<2x8x1xf32>
    %291 = vector.broadcast %290 : vector<2x8x1xf32> to vector<2x8x8xf32>
    %292 = arith.mulf %287, %291 : vector<2x8x8xf32>
    %293 = arith.truncf %292 : vector<2x8x8xf32> to vector<2x8x8xbf16>
    "tpu.trace_start"() <{level = 10 : i32, message = "bqk,bkd->bqd"}> : () -> ()
    %cst_157 = arith.constant dense<0.000000e+00> : vector<2x8x16xf32>
    %294 = tpu.matmul %293, %276, %cst_157 {dimension_numbers = #tpu.dot_dimension_numbers<[2], [1], [1], [2], [0, 0, 0, 1, 1, 2], [0], [0]>} : vector<2x8x8xbf16>, vector<2x8x16xbf16>, vector<2x8x16xf32> -> vector<2x8x16xf32>
    "tpu.trace_stop"() : () -> ()
    %295 = vector.shape_cast %294 : vector<2x8x16xf32> to vector<16x16xf32>
    %296 = arith.truncf %295 : vector<16x16xf32> to vector<16x16xbf16>
    %c2_158 = arith.constant 2 : index
    %c0_159 = arith.constant 0 : index
    %c0_160 = arith.constant 0 : index
    %297 = vector.load %arg15[%c2_158, %c0_159, %c0_160] : memref<4x16x32xbf16, #tpu.memory_space<vmem>>, vector<1x16x32xbf16>
    %298 = vector.shape_cast %297 : vector<1x16x32xbf16> to vector<16x32xbf16>
    %cst_161 = arith.constant dense<0.000000e+00> : vector<16x32xf32>
    %299 = tpu.matmul %296, %298, %cst_161 {dimension_numbers = #tpu.dot_dimension_numbers<[1], [0], [0], [1], [0, 0, 1, 1], [], []>} : vector<16x16xbf16>, vector<16x32xbf16>, vector<16x32xf32> -> vector<16x32xf32>
    %c3 = arith.constant 3 : index
    %c0_162 = arith.constant 0 : index
    %c0_163 = arith.constant 0 : index
    %300 = vector.load %arg9[%c3, %c0_162, %c0_163] : memref<4x32x16xbf16, #tpu.memory_space<vmem>>, vector<1x32x16xbf16>
    %301 = vector.shape_cast %300 : vector<1x32x16xbf16> to vector<32x16xbf16>
    %cst_164 = arith.constant dense<0.000000e+00> : vector<16x16xf32>
    %302 = tpu.matmul %239, %301, %cst_164 {dimension_numbers = #tpu.dot_dimension_numbers<[1], [0], [0], [1], [0, 0, 1, 1], [], []>} : vector<16x32xbf16>, vector<32x16xbf16>, vector<16x16xf32> -> vector<16x16xf32>
    %c3_165 = arith.constant 3 : index
    %c0_166 = arith.constant 0 : index
    %c0_167 = arith.constant 0 : index
    %303 = vector.load %arg12[%c3_165, %c0_166, %c0_167] : memref<4x1x16xf32, #tpu.memory_space<vmem>>, vector<1x1x16xf32>
    %304 = vector.shape_cast %303 : vector<1x1x16xf32> to vector<1x16xf32>
    %305 = vector.broadcast %304 : vector<1x16xf32> to vector<16x16xf32>
    %306 = arith.addf %302, %305 : vector<16x16xf32>
    %c3_168 = arith.constant 3 : index
    %c0_169 = arith.constant 0 : index
    %c0_170 = arith.constant 0 : index
    %307 = vector.load %arg10[%c3_168, %c0_169, %c0_170] : memref<4x32x16xbf16, #tpu.memory_space<vmem>>, vector<1x32x16xbf16>
    %308 = vector.shape_cast %307 : vector<1x32x16xbf16> to vector<32x16xbf16>
    %cst_171 = arith.constant dense<0.000000e+00> : vector<16x16xf32>
    %309 = tpu.matmul %239, %308, %cst_171 {dimension_numbers = #tpu.dot_dimension_numbers<[1], [0], [0], [1], [0, 0, 1, 1], [], []>} : vector<16x32xbf16>, vector<32x16xbf16>, vector<16x16xf32> -> vector<16x16xf32>
    %c3_172 = arith.constant 3 : index
    %c0_173 = arith.constant 0 : index
    %c0_174 = arith.constant 0 : index
    %310 = vector.load %arg13[%c3_172, %c0_173, %c0_174] : memref<4x1x16xf32, #tpu.memory_space<vmem>>, vector<1x1x16xf32>
    %311 = vector.shape_cast %310 : vector<1x1x16xf32> to vector<1x16xf32>
    %312 = vector.broadcast %311 : vector<1x16xf32> to vector<16x16xf32>
    %313 = arith.addf %309, %312 : vector<16x16xf32>
    %c3_175 = arith.constant 3 : index
    %c0_176 = arith.constant 0 : index
    %c0_177 = arith.constant 0 : index
    %314 = vector.load %arg11[%c3_175, %c0_176, %c0_177] : memref<4x32x16xbf16, #tpu.memory_space<vmem>>, vector<1x32x16xbf16>
    %315 = vector.shape_cast %314 : vector<1x32x16xbf16> to vector<32x16xbf16>
    %cst_178 = arith.constant dense<0.000000e+00> : vector<16x16xf32>
    %316 = tpu.matmul %239, %315, %cst_178 {dimension_numbers = #tpu.dot_dimension_numbers<[1], [0], [0], [1], [0, 0, 1, 1], [], []>} : vector<16x32xbf16>, vector<32x16xbf16>, vector<16x16xf32> -> vector<16x16xf32>
    %c3_179 = arith.constant 3 : index
    %c0_180 = arith.constant 0 : index
    %c0_181 = arith.constant 0 : index
    %317 = vector.load %arg14[%c3_179, %c0_180, %c0_181] : memref<4x1x16xf32, #tpu.memory_space<vmem>>, vector<1x1x16xf32>
    %318 = vector.shape_cast %317 : vector<1x1x16xf32> to vector<1x16xf32>
    %319 = vector.broadcast %318 : vector<1x16xf32> to vector<16x16xf32>
    %320 = arith.addf %316, %319 : vector<16x16xf32>
    %321 = arith.mulf %306, %1 : vector<16x16xf32>
    %cst_182 = arith.constant dense<0.000000e+00> : vector<16x16xf32>
    %322 = tpu.matmul %306, %3, %cst_182 {dimension_numbers = #tpu.dot_dimension_numbers<[1], [0], [0], [1], [0, 0, 1, 1], [], []>} : vector<16x16xf32>, vector<16x16xf32>, vector<16x16xf32> -> vector<16x16xf32>
    %323 = arith.mulf %322, %2 : vector<16x16xf32>
    %324 = arith.addf %321, %323 : vector<16x16xf32>
    %325 = arith.mulf %313, %1 : vector<16x16xf32>
    %cst_183 = arith.constant dense<0.000000e+00> : vector<16x16xf32>
    %326 = tpu.matmul %313, %3, %cst_183 {dimension_numbers = #tpu.dot_dimension_numbers<[1], [0], [0], [1], [0, 0, 1, 1], [], []>} : vector<16x16xf32>, vector<16x16xf32>, vector<16x16xf32> -> vector<16x16xf32>
    %327 = arith.mulf %326, %2 : vector<16x16xf32>
    %328 = arith.addf %325, %327 : vector<16x16xf32>
    %cst_184 = arith.constant 1.250000e-01 : f32
    %329 = vector.broadcast %cst_184 : f32 to vector<16x16xf32>
    %330 = arith.mulf %324, %329 : vector<16x16xf32>
    %331 = vector.shape_cast %330 : vector<16x16xf32> to vector<2x8x16xf32>
    %332 = arith.truncf %331 : vector<2x8x16xf32> to vector<2x8x16xbf16>
    %333 = vector.shape_cast %328 : vector<16x16xf32> to vector<2x8x16xf32>
    %334 = arith.truncf %333 : vector<2x8x16xf32> to vector<2x8x16xbf16>
    %335 = vector.shape_cast %320 : vector<16x16xf32> to vector<2x8x16xf32>
    %336 = arith.truncf %335 : vector<2x8x16xf32> to vector<2x8x16xbf16>
    "tpu.trace_start"() <{level = 10 : i32, message = "bqd,bkd->bqk"}> : () -> ()
    %cst_185 = arith.constant dense<0.000000e+00> : vector<2x8x8xf32>
    %337 = tpu.matmul %332, %334, %cst_185 {dimension_numbers = #tpu.dot_dimension_numbers<[2], [2], [1], [1], [0, 0, 0, 1, 1, 1], [0], [0]>} : vector<2x8x16xbf16>, vector<2x8x16xbf16>, vector<2x8x8xf32> -> vector<2x8x8xf32>
    "tpu.trace_stop"() : () -> ()
    %338 = vector.shape_cast %4 : vector<8x8xf32> to vector<1x8x8xf32>
    %339 = vector.broadcast %338 : vector<1x8x8xf32> to vector<2x8x8xf32>
    %340 = arith.addf %337, %339 : vector<2x8x8xf32>
    %cst_186 = arith.constant 2.000000e+00 : f32
    %341 = vector.broadcast %cst_186 : f32 to vector<2x8x8xf32>
    %342 = arith.mulf %340, %341 : vector<2x8x8xf32>
    %cst_187 = arith.constant dense<0xFF800000> : vector<2x8xf32>
    %343 = vector.multi_reduction <maximumf>, %342, %cst_187 [2] : vector<2x8x8xf32> to vector<2x8xf32>
    %344 = vector.shape_cast %343 : vector<2x8xf32> to vector<2x8x1xf32>
    %345 = vector.broadcast %344 : vector<2x8x1xf32> to vector<2x8x8xf32>
    %346 = arith.subf %342, %345 : vector<2x8x8xf32>
    %347 = math.exp %346 : vector<2x8x8xf32>
    %cst_188 = arith.constant dense<0.000000e+00> : vector<2x8xf32>
    %348 = vector.multi_reduction <add>, %347, %cst_188 [2] : vector<2x8x8xf32> to vector<2x8xf32>
    %349 = vector.shape_cast %348 : vector<2x8xf32> to vector<2x8x1xf32>
    %350 = tpu.reciprocal %349 {approx = true} : vector<2x8x1xf32> -> vector<2x8x1xf32>
    %351 = vector.broadcast %350 : vector<2x8x1xf32> to vector<2x8x8xf32>
    %352 = arith.mulf %347, %351 : vector<2x8x8xf32>
    %353 = arith.truncf %352 : vector<2x8x8xf32> to vector<2x8x8xbf16>
    "tpu.trace_start"() <{level = 10 : i32, message = "bqk,bkd->bqd"}> : () -> ()
    %cst_189 = arith.constant dense<0.000000e+00> : vector<2x8x16xf32>
    %354 = tpu.matmul %353, %336, %cst_189 {dimension_numbers = #tpu.dot_dimension_numbers<[2], [1], [1], [2], [0, 0, 0, 1, 1, 2], [0], [0]>} : vector<2x8x8xbf16>, vector<2x8x16xbf16>, vector<2x8x16xf32> -> vector<2x8x16xf32>
    "tpu.trace_stop"() : () -> ()
    %355 = vector.shape_cast %354 : vector<2x8x16xf32> to vector<16x16xf32>
    %356 = arith.truncf %355 : vector<16x16xf32> to vector<16x16xbf16>
    %c3_190 = arith.constant 3 : index
    %c0_191 = arith.constant 0 : index
    %c0_192 = arith.constant 0 : index
    %357 = vector.load %arg15[%c3_190, %c0_191, %c0_192] : memref<4x16x32xbf16, #tpu.memory_space<vmem>>, vector<1x16x32xbf16>
    %358 = vector.shape_cast %357 : vector<1x16x32xbf16> to vector<16x32xbf16>
    %cst_193 = arith.constant dense<0.000000e+00> : vector<16x32xf32>
    %359 = tpu.matmul %356, %358, %cst_193 {dimension_numbers = #tpu.dot_dimension_numbers<[1], [0], [0], [1], [0, 0, 1, 1], [], []>} : vector<16x16xbf16>, vector<16x32xbf16>, vector<16x32xf32> -> vector<16x32xf32>
    %360 = arith.addf %299, %359 : vector<16x32xf32>
    %cst_194 = arith.constant 2.000000e+00 : f32
    %361 = vector.broadcast %cst_194 : f32 to vector<16x32xf32>
    %362 = arith.mulf %238, %361 : vector<16x32xf32>
    %363 = arith.addf %362, %360 : vector<16x32xf32>
    %c1_195 = arith.constant 1 : index
    %c0_196 = arith.constant 0 : index
    %c0_197 = arith.constant 0 : index
    %364 = vector.load %arg16[%c1_195, %c0_196, %c0_197] : memref<2x1x32xf32, #tpu.memory_space<vmem>>, vector<1x1x32xf32>
    %365 = vector.shape_cast %364 : vector<1x1x32xf32> to vector<1x32xf32>
    %366 = vector.broadcast %365 : vector<1x32xf32> to vector<16x32xf32>
    %367 = arith.addf %363, %366 : vector<16x32xf32>
    %c1_198 = arith.constant 1 : index
    %c0_199 = arith.constant 0 : index
    %c0_200 = arith.constant 0 : index
    %368 = vector.load %arg7[%c1_198, %c0_199, %c0_200] : memref<2x1x32xf32, #tpu.memory_space<vmem>>, vector<1x1x32xf32>
    %369 = vector.shape_cast %368 : vector<1x1x32xf32> to vector<1x32xf32>
    %c1_201 = arith.constant 1 : index
    %c0_202 = arith.constant 0 : index
    %c0_203 = arith.constant 0 : index
    %370 = vector.load %arg8[%c1_201, %c0_202, %c0_203] : memref<2x1x32xf32, #tpu.memory_space<vmem>>, vector<1x1x32xf32>
    %371 = vector.shape_cast %370 : vector<1x1x32xf32> to vector<1x32xf32>
    %cst_204 = arith.constant dense<0.000000e+00> : vector<16xf32>
    %372 = vector.multi_reduction <add>, %367, %cst_204 [1] : vector<16x32xf32> to vector<16xf32>
    %373 = vector.shape_cast %372 : vector<16xf32> to vector<16x1xf32>
    %cst_205 = arith.constant 3.200000e+01 : f32
    %374 = vector.broadcast %cst_205 : f32 to vector<16x1xf32>
    %375 = arith.divf %373, %374 : vector<16x1xf32>
    %376 = vector.broadcast %375 : vector<16x1xf32> to vector<16x32xf32>
    %377 = arith.subf %367, %376 : vector<16x32xf32>
    %378 = arith.mulf %377, %377 : vector<16x32xf32>
    %cst_206 = arith.constant dense<0.000000e+00> : vector<16xf32>
    %379 = vector.multi_reduction <add>, %378, %cst_206 [1] : vector<16x32xf32> to vector<16xf32>
    %380 = vector.shape_cast %379 : vector<16xf32> to vector<16x1xf32>
    %cst_207 = arith.constant 3.200000e+01 : f32
    %381 = vector.broadcast %cst_207 : f32 to vector<16x1xf32>
    %382 = arith.divf %380, %381 : vector<16x1xf32>
    %cst_208 = arith.constant 9.99999974E-6 : f32
    %383 = vector.broadcast %cst_208 : f32 to vector<16x1xf32>
    %384 = arith.addf %382, %383 : vector<16x1xf32>
    %385 = math.rsqrt %384 : vector<16x1xf32>
    %386 = vector.broadcast %385 : vector<16x1xf32> to vector<16x32xf32>
    %387 = arith.mulf %377, %386 : vector<16x32xf32>
    %388 = vector.broadcast %369 : vector<1x32xf32> to vector<16x32xf32>
    %389 = arith.mulf %387, %388 : vector<16x32xf32>
    %390 = vector.broadcast %371 : vector<1x32xf32> to vector<16x32xf32>
    %391 = arith.addf %389, %390 : vector<16x32xf32>
    %392 = arith.truncf %391 : vector<16x32xf32> to vector<16x32xbf16>
    %c1_209 = arith.constant 1 : index
    %c0_210 = arith.constant 0 : index
    %c0_211 = arith.constant 0 : index
    %393 = vector.load %arg17[%c1_209, %c0_210, %c0_211] : memref<2x32x128xbf16, #tpu.memory_space<vmem>>, vector<1x32x128xbf16>
    %394 = vector.shape_cast %393 : vector<1x32x128xbf16> to vector<32x128xbf16>
    %cst_212 = arith.constant dense<0.000000e+00> : vector<16x128xf32>
    %395 = tpu.matmul %392, %394, %cst_212 {dimension_numbers = #tpu.dot_dimension_numbers<[1], [0], [0], [1], [0, 0, 1, 1], [], []>} : vector<16x32xbf16>, vector<32x128xbf16>, vector<16x128xf32> -> vector<16x128xf32>
    %c1_213 = arith.constant 1 : index
    %c0_214 = arith.constant 0 : index
    %c0_215 = arith.constant 0 : index
    %396 = vector.load %arg18[%c1_213, %c0_214, %c0_215] : memref<2x1x128xf32, #tpu.memory_space<vmem>>, vector<1x1x128xf32>
    %397 = vector.shape_cast %396 : vector<1x1x128xf32> to vector<1x128xf32>
    %398 = vector.broadcast %397 : vector<1x128xf32> to vector<16x128xf32>
    %399 = arith.addf %395, %398 : vector<16x128xf32>
    %cst_216 = arith.constant 5.000000e-01 : f32
    %400 = vector.broadcast %cst_216 : f32 to vector<16x128xf32>
    %401 = arith.mulf %400, %399 : vector<16x128xf32>
    %cst_217 = arith.constant 0.797884583 : f32
    %402 = vector.broadcast %cst_217 : f32 to vector<16x128xf32>
    %403 = arith.mulf %402, %399 : vector<16x128xf32>
    %cst_218 = arith.constant 4.471500e-02 : f32
    %404 = vector.broadcast %cst_218 : f32 to vector<16x128xf32>
    %405 = arith.mulf %404, %399 : vector<16x128xf32>
    %406 = arith.mulf %405, %399 : vector<16x128xf32>
    %cst_219 = arith.constant 1.000000e+00 : f32
    %407 = vector.broadcast %cst_219 : f32 to vector<16x128xf32>
    %408 = arith.addf %407, %406 : vector<16x128xf32>
    %409 = arith.mulf %403, %408 : vector<16x128xf32>
    %410 = math.tanh %409 : vector<16x128xf32>
    %cst_220 = arith.constant 1.000000e+00 : f32
    %411 = vector.broadcast %cst_220 : f32 to vector<16x128xf32>
    %412 = arith.addf %411, %410 : vector<16x128xf32>
    %413 = arith.mulf %401, %412 : vector<16x128xf32>
    %414 = arith.truncf %413 : vector<16x128xf32> to vector<16x128xbf16>
    %c1_221 = arith.constant 1 : index
    %c0_222 = arith.constant 0 : index
    %c0_223 = arith.constant 0 : index
    %415 = vector.load %arg19[%c1_221, %c0_222, %c0_223] : memref<2x128x32xbf16, #tpu.memory_space<vmem>>, vector<1x128x32xbf16>
    %416 = vector.shape_cast %415 : vector<1x128x32xbf16> to vector<128x32xbf16>
    %cst_224 = arith.constant dense<0.000000e+00> : vector<16x32xf32>
    %417 = tpu.matmul %414, %416, %cst_224 {dimension_numbers = #tpu.dot_dimension_numbers<[1], [0], [0], [1], [0, 0, 1, 1], [], []>} : vector<16x128xbf16>, vector<128x32xbf16>, vector<16x32xf32> -> vector<16x32xf32>
    %c1_225 = arith.constant 1 : index
    %c0_226 = arith.constant 0 : index
    %c0_227 = arith.constant 0 : index
    %418 = vector.load %arg20[%c1_225, %c0_226, %c0_227] : memref<2x1x32xf32, #tpu.memory_space<vmem>>, vector<1x1x32xf32>
    %419 = vector.shape_cast %418 : vector<1x1x32xf32> to vector<1x32xf32>
    %420 = vector.broadcast %419 : vector<1x32xf32> to vector<16x32xf32>
    %421 = arith.addf %417, %420 : vector<16x32xf32>
    %cst_228 = arith.constant 2.000000e+00 : f32
    %422 = vector.broadcast %cst_228 : f32 to vector<16x32xf32>
    %423 = arith.mulf %391, %422 : vector<16x32xf32>
    %424 = arith.addf %423, %421 : vector<16x32xf32>
    %c0_229 = arith.constant 0 : index
    %c0_230 = arith.constant 0 : index
    %425 = vector.load %arg21[%c0_229, %c0_230] : memref<1x32xf32, #tpu.memory_space<vmem>>, vector<1x32xf32>
    %c0_231 = arith.constant 0 : index
    %c0_232 = arith.constant 0 : index
    %426 = vector.load %arg22[%c0_231, %c0_232] : memref<1x32xf32, #tpu.memory_space<vmem>>, vector<1x32xf32>
    %cst_233 = arith.constant dense<0.000000e+00> : vector<16xf32>
    %427 = vector.multi_reduction <add>, %424, %cst_233 [1] : vector<16x32xf32> to vector<16xf32>
    %428 = vector.shape_cast %427 : vector<16xf32> to vector<16x1xf32>
    %cst_234 = arith.constant 3.200000e+01 : f32
    %429 = vector.broadcast %cst_234 : f32 to vector<16x1xf32>
    %430 = arith.divf %428, %429 : vector<16x1xf32>
    %431 = vector.broadcast %430 : vector<16x1xf32> to vector<16x32xf32>
    %432 = arith.subf %424, %431 : vector<16x32xf32>
    %433 = arith.mulf %432, %432 : vector<16x32xf32>
    %cst_235 = arith.constant dense<0.000000e+00> : vector<16xf32>
    %434 = vector.multi_reduction <add>, %433, %cst_235 [1] : vector<16x32xf32> to vector<16xf32>
    %435 = vector.shape_cast %434 : vector<16xf32> to vector<16x1xf32>
    %cst_236 = arith.constant 3.200000e+01 : f32
    %436 = vector.broadcast %cst_236 : f32 to vector<16x1xf32>
    %437 = arith.divf %435, %436 : vector<16x1xf32>
    %cst_237 = arith.constant 9.99999974E-6 : f32
    %438 = vector.broadcast %cst_237 : f32 to vector<16x1xf32>
    %439 = arith.addf %437, %438 : vector<16x1xf32>
    %440 = math.rsqrt %439 : vector<16x1xf32>
    %441 = vector.broadcast %440 : vector<16x1xf32> to vector<16x32xf32>
    %442 = arith.mulf %432, %441 : vector<16x32xf32>
    %443 = vector.broadcast %425 : vector<1x32xf32> to vector<16x32xf32>
    %444 = arith.mulf %442, %443 : vector<16x32xf32>
    %445 = vector.broadcast %426 : vector<1x32xf32> to vector<16x32xf32>
    %446 = arith.addf %444, %445 : vector<16x32xf32>
    %c0_238 = arith.constant 0 : index
    %c0_239 = arith.constant 0 : index
    %447 = vector.load %arg23[%c0_238, %c0_239] : memref<16x32xf32, #tpu.memory_space<vmem>>, vector<16x32xf32>
    tpu.vector_store %arg23[%c0_238, %c0_239], %446 {strides = array<i32>} : memref<16x32xf32, #tpu.memory_space<vmem>>, vector<16x32xf32>,
    return
  }
}

</mosaic_0001>

<bundles_post_ra>
// kernel: chatglm_forward.1
= control target key start
LH: loop header
LB: loop body
LE: loop exit
PB: predicated region body
PF: predicated region fallthrough
CT: control target
= control target key end

     0   :  { %vm86_vm0 = vcmask 261120   ;;  %v4110_v15 = vmov 0.0   ;;  %vm4111_vm1 = vmmov 0   ;;  %vm328_vm2 = vcmask 130048   ;;  %s4916_s0 = inlined_call_operand.vmem [shape: f32[16,32], index: 0, kind: input, shape index: {}]   ;;  %s4917_s9 = inlined_call_operand.vmem [shape: bf16[4,32,16], index: 9, kind: input, shape index: {}]   ;;  %s4918_s10 = inlined_call_operand.vmem [shape: bf16[4,32,16], index: 10, kind: input, shape index: {}]   ;;  %s4919_s11 = inlined_call_operand.vmem [shape: bf16[4,32,16], index: 11, kind: input, shape index: {}]   ;;  %s4920_s3 = inlined_call_operand.vmem [shape: f32[16,16], index: 3, kind: input, shape index: {}]   ;;  %s4921_s5 = inlined_call_operand.vmem [shape: f32[2,1,32], index: 5, kind: input, shape index: {}]   ;;  %s4922_s6 = inlined_call_operand.vmem [shape: f32[2,1,32], index: 6, kind: input, shape index: {}]   ;;  %s4923_s12 = inlined_call_operand.vmem [shape: f32[4,1,16], index: 12, kind: input, shape index: {}]   ;;  %s4924_s13 = inlined_call_operand.vmem [shape: f32[4,1,16], index: 13, kind: input, shape index: {}]   ;;  %s4925_s2 = inlined_call_operand.vmem [shape: f32[16,16], index: 2, kind: input, shape index: {}]   ;;  %s4926_s1 = inlined_call_operand.vmem [shape: f32[16,16], index: 1, kind: input, shape index: {}]   ;;  %s4927_s14 = inlined_call_operand.vmem [shape: f32[4,1,16], index: 14, kind: input, shape index: {}]   ;;  %s4928_s4 = inlined_call_operand.vmem [shape: f32[8,8], index: 4, kind: input, shape index: {}]   ;;  %s4929_s15 = inlined_call_operand.vmem [shape: bf16[4,16,32], index: 15, kind: input, shape index: {}]   ;;  %s4930_s16 = inlined_call_operand.vmem [shape: f32[2,1,32], index: 16, kind: input, shape index: {}]   ;;  %s4931_s17 = inlined_call_operand.vmem [shape: bf16[2,32,128], index: 17, kind: input, shape index: {}]   ;;  %s4932_s7 = inlined_call_operand.vmem [shape: f32[2,1,32], index: 7, kind: input, shape index: {}]   ;;  %s4933_s8 = inlined_call_operand.vmem [shape: f32[2,1,32], index: 8, kind: input, shape index: {}]   ;;  %s4934_s19 = inlined_call_operand.vmem [shape: bf16[2,128,32], index: 19, kind: input, shape index: {}]   ;;  %s4935_s18 = inlined_call_operand.vmem [shape: f32[2,1,128], index: 18, kind: input, shape index: {}]   ;;  %s4936_s20 = inlined_call_operand.vmem [shape: f32[2,1,32], index: 20, kind: input, shape index: {}]   ;;  %s4937_s21 = inlined_call_operand.vmem [shape: f32[1,32], index: 21, kind: input, shape index: {}]   ;;  %s4938_s22 = inlined_call_operand.vmem [shape: f32[1,32], index: 22, kind: input, shape index: {}]   ;;  %s4939_s23 = inlined_call_operand.vmem [shape: f32[16,32], index: 23, kind: output, shape index: {}]  }
   0x1   :  { %4948 = sst [smem:[#allocation2_spill]] %s4916_s0  ;;  %3665 = vmatprep.subr.bf16.mxu0 %v4110_v15  ;;  %3673 = vmatprep.subr.bf16.mxu1 %v4110_v15  ;;  %v3335_v46 = vld [vmem:[%s4924_s13] ss:$0 sm:$0xff]  ;;  %v4329_v59 = vld [vmem:[%s4926_s1 + $0x8] sm:$0xff]  ;;  %vm629_vm3 = vcmask 1043456   ;;  %vm601_vm4 = vcmask 64512  }
   0x2   :  { %4949 = sst [smem:[#allocation3_spill]] %s4917_s9  ;;  %3669 = vmatprep.mubr.msk.bf16.mxu0 %vm4111_vm1, %v4110_v15  ;;  %3677 = vmatprep.mubr.msk.bf16.mxu1 %vm4111_vm1, %v4110_v15  ;;  %v4334_v60 = vld [vmem:[%s4925_s2 + $0x8] sm:$0xff]  ;;  %v4339_v62 = vld [vmem:[%s4926_s1] sm:$0xff] }
   0x3   :  { %4950 = sst [smem:[#allocation4_spill]] %s4918_s10  ;;  %v4344_v63 = vld [vmem:[%s4925_s2] sm:$0xff] }
   0x4   :  { %4951 = sst [smem:[#allocation5_spill]] %s4919_s11 }
   0x5   :  { %4952 = sst [smem:[#allocation6_spill]] %s4920_s3 }
   0x6   :  { %4953 = sst [smem:[#allocation7_spill]] %s4921_s5 }
   0x7   :  { %4954 = sst [smem:[#allocation8_spill]] %s4922_s6 }
   0x8   :  { %4955 = sst [smem:[#allocation9_spill]] %s4923_s12 }
   0x9   :  { %s4956_s24 = sld [smem:[#allocation2_spill]] }
   0xa   :  { %s4957_s26 = sld [smem:[#allocation3_spill]] }
   0xb   :  { %s4958_s12 = sld [smem:[#allocation4_spill]] }
   0xc   :  { %s4960_s9 = sld [smem:[#allocation7_spill]] }
   0xd   :  { %s4961_s27 = sld [smem:[#allocation8_spill]] }
   0xe   :  { %s4962_s11 = sld [smem:[#allocation5_spill]] }
   0xf   :  { %v75_v0 = vld [vmem:[%s4956_s24] sm:$0xff]  ;;  %v76_v1 = vld [vmem:[%s4956_s24 + $0x8] sm:$0xff]  ;;  %s4959_s24 = sld [smem:[#allocation6_spill]] }
  0x10   :  { %v87_v2 = vsel %vm86_vm0, %v75_v0, 0.0  ;;  %v90_v3 = vsel %vm86_vm0, %v76_v1, 0.0  ;;  %v3995_v14 = vld [vmem:[%s4957_s26 + $0x8] sm:$0xff]   ;;  %v3997_v17 = vld [vmem:[%s4957_s26] sm:$0xff]   ;;  %s4963_s10 = sld [smem:[#allocation9_spill]] }
  0x11   :  { %88 = vadd.xlane.f32.xlu0 %v87_v2  ;;  %v3996_v16 = vld [vmem:[%s4958_s12 + $0x8] sm:$0xff]   ;;  %3666 = vmatpush3.bf16.msra.mxu0 %v3995_v14  ;;  %v3998_v18 = vld [vmem:[%s4958_s12] sm:$0xff]  }
  0x12   :  { %3674 = vmatpush3.bf16.msra.mxu1 %v3996_v16  ;;  %3667 = vmatprep.subr.bf16.mxu0 %v4110_v15  ;;  %v3329_v28 = vld [vmem:[%s4960_s9] ss:$0 sm:$0xff] }
  0x13   :  { %3675 = vmatprep.subr.bf16.mxu1 %v4110_v15  ;;  %v3330_v32 = vld [vmem:[%s4961_s27] ss:$0 sm:$0xff] }
  0x14   :  { %v3999_v36 = vld [vmem:[%s4962_s11 + $0x8] sm:$0xff]   ;;  %v4000_v38 = vld [vmem:[%s4962_s11] sm:$0xff]  }
  0x15   :  { %91 = vadd.xlane.f32.xlu0 %v90_v3  ;;  %3668 = vmatpush3.bf16.msra.mxu0 %v3997_v17  ;;  %v4266_v19 = vld [vmem:[%s4959_s24 + $0x8] sm:$0xff]  ;;  %v4305_v39 = vld [vmem:[%s4959_s24] sm:$0xff] }
  0x16   :  { %3676 = vmatpush3.bf16.msra.mxu1 %v3998_v18  ;;  %3681 = vmatprep.subr.bf16.mxu0 %v4110_v15  ;;  %v3331_v40 = vld [vmem:[%s4963_s10] ss:$0 sm:$0xff] }
  0x17   :  { %3689 = vmatprep.subr.mxu1 %v4266_v19  ;;  %v3339_v14 = vld [vmem:[%s4927_s14] ss:$0 sm:$0xff] }
  0x9a   :  { %v89_v4 = vpop.xlane.xlu0 %88 }
  0x9b   :  { %v94_v5 = vmul.f32 0.03125, %v89_v4 }
  0x9d   :  { %v96_v6 = vsub.f32 %v75_v0, %v94_v5 }
  0x9e   :  { %v92_v7 = vpop.xlane.xlu0 %91 }
  0x9f   :  { %v95_v8 = vmul.f32 0.03125, %v92_v7  ;;  %v98_v9 = vmul.f32 %v96_v6, %v96_v6 }
  0xa1   :  { %v97_v10 = vsub.f32 %v76_v1, %v95_v8  ;;  %v100_v11 = vsel %vm86_vm0, %v98_v9, 0.0 }
  0xa2   :  { %101 = vadd.xlane.f32.xlu1 %v100_v11 }
  0xa3   :  { %v99_v12 = vmul.f32 %v97_v10, %v97_v10 }
  0xa5   :  { %v103_v13 = vsel %vm86_vm0, %v99_v12, 0.0 }
  0xa6   :  { %104 = vadd.xlane.f32.xlu1 %v103_v13 }
 0x12b   :  { %v102_v20 = vpop.xlane.xlu1 %101 }
 0x12c   :  { %v106_v21 = vmul.f32 0.03125, %v102_v20 }
 0x12e   :  { %v108_v22 = vadd.f32 1e-05, %v106_v21 }
 0x12f   :  { %v105_v23 = vpop.xlane.xlu1 %104 }
 0x130   :  { %4043 = vrsqrt.f32 %v108_v22  ;;  %v107_v24 = vmul.f32 0.03125, %v105_v23 }
 0x132   :  { %v109_v25 = vadd.f32 1e-05, %v107_v24 }
 0x134   :  { %4045 = vrsqrt.f32 %v109_v25 }
 0x13d   :  { %v4044_v26 = vpop.eup %4043 }
 0x13e   :  { %v112_v27 = vmul.f32 %v4044_v26, %v96_v6 }
 0x140   :  { %v120_v30 = vmul.f32 %v3329_v28, %v112_v27 }
 0x141   :  { %v4046_v29 = vpop.eup %4045 }
 0x142   :  { %v113_v31 = vmul.f32 %v4046_v29, %v97_v10  ;;  %v4275_v34 = vadd.f32 %v3330_v32, %v120_v30 }
 0x144   :  { %v121_v33 = vmul.f32 %v3329_v28, %v113_v31  ;;  %v4374_v31 = vld [vmem:[%s4928_s4] sm:$0xff] }
 0x146   :  { %v4277_v35 = vadd.f32 %v3330_v32, %v121_v33 }
 0x148   :  { %v4284_v37 = vpack.c.bf16 %v4277_v35, %v4275_v34 }
 0x14a   :  { %3670 = vmatmul.mubr.msk.bf16.vlgmr.msra.gmra.mxu0 %vm86_vm0, %v4284_v37  ;;  %3678 = vmatmul.mubr.msk.bf16.vlgmr.msra.gmra.mxu1 %vm86_vm0, %v4284_v37 }
 0x14b   :  { %3682 = vmatpush3.bf16.msra.mxu0 %v3999_v36  ;;  %3685 = vmatprep.mubr.msk.bf16.mxu0 %vm4111_vm1, %v4110_v15 }
 0x14c   :  { %3683 = vmatprep.subr.bf16.mxu0 %v4110_v15  ;;  %3690 = vmatpush3.msra.mxu1 %v4266_v19 }
 0x14d   :  { %3691 = vmatprep.subr.mxu1 %v4305_v39 }
 0x14e   :  { %3692 = vmatpush3.msra.mxu1 %v4305_v39 }
 0x14f   :  { %3684 = vmatpush3.bf16.msra.mxu0 %v4000_v38  ;;  %3696 = vmatprep.subr.mxu1 %v4266_v19 }
 0x150   :  { %3703 = vmatprep.subr.bf16.mxu0 %v4110_v15 }
 0x152   :  { %3686 = vmatmul.mubr.msk.bf16.vlgmr.msra.gmra.mxu0 %vm86_vm0, %v4284_v37 }
 0x153   :  { %3705 = vmatprep.mubr.msk.bf16.mxu0 %vm4111_vm1, %v4110_v15 }
 0x20a   :  { %v191_v41 = vpop.f32.mrf.mxu0  ;;  %v255_v42 = vpop.f32.mrf.mxu1 }
 0x20b   :  { %v192_v43 = vadd.f32 %v3331_v40, %v191_v41  ;;  %v256_v50 = vadd.f32 %v3335_v46, %v255_v42 }
 0x20c   :  { %v3671_v44 = vpop.f32.mrf.mxu0  ;;  %v3679_v45 = vpop.f32.mrf.mxu1 }
 0x20d   :  { %3693 = vmatprep.mubr.msk.f32.mxu1 %vm328_vm2, %v192_v43  ;;  %v414_v4 = vmul.f32 %v256_v50, %v4339_v62  ;;  %v326_v10 = vmul.f32 %v192_v43, %v4339_v62 }
 0x20e   :  { %v194_v47 = vpop.f32.mrf.mxu0  ;;  %v258_v48 = vpop.f32.mrf.mxu1 }
 0x20f   :  { %v195_v49 = vadd.f32 %v3331_v40, %v194_v47  ;;  %v259_v54 = vadd.f32 %v3335_v46, %v258_v48 }
 0x210   :  { %v3672_v51 = vpop.f32.mrf.mxu0  ;;  %v3680_v52 = vpop.f32.mrf.mxu1 }
 0x211   :  { %3694 = vmatmul.mubr.msk.f32.vlgmr.msra.gmra.mxu1 %vm328_vm2, %v195_v49  ;;  %v415_v1 = vmul.f32 %v259_v54, %v4329_v59  ;;  %v327_v6 = vmul.f32 %v195_v49, %v4329_v59 }
 0x212   :  { %v319_v53 = vpop.f32.mrf.mxu0  ;;  %3697 = vmatpush3.msra.mxu1 %v4266_v19  ;;  %3700 = vmatprep.mubr.msk.f32.mxu1 %vm328_vm2, %v256_v50 }
 0x213   :  { %3698 = vmatprep.subr.mxu1 %v4305_v39  ;;  %v320_v21 = vadd.f32 %v3339_v14, %v319_v53 }
 0x214   :  { %v3687_v55 = vpop.f32.mrf.mxu0  ;;  %3699 = vmatpush3.msra.mxu1 %v4305_v39 }
 0x215   :  { %3701 = vmatmul.mubr.msk.f32.vlgmr.msra.gmra.mxu1 %vm328_vm2, %v259_v54  ;;  %3709 = vmatprep.subr.bf16.mxu1 %v4110_v15  ;;  %v507_v26 = vpack.c.bf16 %v320_v21, %v320_v21 }
 0x216   :  { %v322_v56 = vpop.f32.mrf.mxu0  ;;  %3711 = vmatprep.mubr.msk.bf16.mxu1 %vm4111_vm1, %v4110_v15 }
 0x217   :  { %v323_v16 = vadd.f32 %v3339_v14, %v322_v56  ;;  %v631_v30 = vsel %vm629_vm3, %v507_v26, 0 }
 0x218   :  { %v3688_v57 = vpop.f32.mrf.mxu0 }
 0x219   :  { %v508_v24 = vpack.c.bf16 %v323_v16, %v323_v16 }
 0x21b   :  { %v677_v28 = vsel %vm629_vm3, %v508_v24, 0 }
 0x2d1   :  { %v3695_v58 = vpop.f32.mrf.mxu1 }
 0x2d2   :  { %v411_v2 = vmul.f32 %v3695_v58, %v4334_v60 }
 0x2d3   :  { %v401_v61 = vpop.f32.mrf.mxu1 }
 0x2d4   :  { %v410_v7 = vmul.f32 %v401_v61, %v4344_v63  ;;  %v413_v11 = vadd.f32 %v411_v2, %v327_v6  ;;  %v4002_v6 = vld [vmem:[%s4957_s26 + $0x18] sm:$0xff]  }
 0x2d5   :  { %v3702_v0 = vpop.f32.mrf.mxu1 }
 0x2d6   :  { %v498_v3 = vmul.f32 %v3702_v0, %v4334_v60  ;;  %v412_v17 = vadd.f32 %v410_v7, %v326_v10  ;;  %v502_v22 = vmul.f32 0.25, %v413_v11  ;;  %v4005_v10 = vld [vmem:[%s4962_s11 + $0x18] sm:$0xff]   ;;  %v4006_v11 = vld [vmem:[%s4962_s11 + $0x10] sm:$0xff]  }
 0x2d7   :  { %v488_v5 = vpop.f32.mrf.mxu1 }
 0x2d8   :  { %v500_v8 = vadd.f32 %v498_v3, %v415_v1  ;;  %v497_v9 = vmul.f32 %v488_v5, %v4344_v63  ;;  %v501_v25 = vmul.f32 0.25, %v412_v17  ;;  %v504_v27 = vpack.c.bf16 %v502_v22, %v502_v22  ;;  %v4001_v3 = vld [vmem:[%s4958_s12 + $0x18] sm:$0xff]   ;;  %v3356_v22 = vld [vmem:[%s4963_s10 + $0x1] ss:$0 sm:$0xff] }
 0x2da   :  { %v506_v12 = vpack.c.bf16 %v500_v8, %v500_v8  ;;  %v499_v13 = vadd.f32 %v497_v9, %v414_v4  ;;  %v503_v29 = vpack.c.bf16 %v501_v25, %v501_v25  ;;  %v4003_v8 = vld [vmem:[%s4958_s12 + $0x10] sm:$0xff]  }
 0x2db   :  { %v4004_v9 = vld [vmem:[%s4957_s26 + $0x10] sm:$0xff]  }
 0x2dc   :  { %v505_v18 = vpack.c.bf16 %v499_v13, %v499_v13  ;;  %v559_v20 = vsel %vm328_vm2, %v506_v12, 0 }
 0x2dd   :  { %3710 = vmatpush3.bf16.xpose.msra.mxu1 %v559_v20 }
 0x2de   :  { %v513_v23 = vsel %vm328_vm2, %v505_v18, 0  ;;  %3721 = vmatprep.subr.bf16.mxu1 %v4110_v15 }
 0x2df   :  { %3704 = vmatpush3.bf16.xpose.msra.mxu0 %v513_v23 }
 0x2e0   :  { %3715 = vmatprep.subr.bf16.mxu0 %v4110_v15 }
 0x2e4   :  { %3712 = vmatmul.mubr.msk.bf16.vlgmr.msra.gmra.mxu1 %vm328_vm2, %v504_v27 }
 0x2e5   :  { %3722 = vmatpush3.bf16.msra.mxu1 %v677_v28  ;;  %3723 = vmatprep.mubr.msk.bf16.mxu1 %vm4111_vm1, %v4110_v15 }
 0x2e6   :  { %3706 = vmatmul.mubr.msk.bf16.vlgmr.msra.gmra.mxu0 %vm328_vm2, %v503_v29  ;;  %3735 = vmatprep.subr.bf16.mxu1 %v4110_v15 }
 0x2e7   :  { %3716 = vmatpush3.bf16.msra.mxu0 %v631_v30  ;;  %3717 = vmatprep.mubr.msk.bf16.mxu0 %vm4111_vm1, %v4110_v15 }
 0x2e8   :  { %3727 = vmatprep.subr.bf16.mxu0 %v4110_v15 }
 0x3a4   :  { %v595_v32 = vpop.f32.mrf.mxu1 }
 0x3a5   :  { %v596_v33 = vadd.f32 %v595_v32, %v4374_v31 }
 0x3a6   :  { %v549_v36 = vpop.f32.mrf.mxu0  ;;  %v3713_v38 = vpop.f32.mrf.mxu1 }
 0x3a7   :  { %v550_v40 = vadd.f32 %v549_v36, %v4374_v31  ;;  %v605_v41 = vsel %vm601_vm4, %v596_v33, -inf  ;;  %v3374_v38 = vld [vmem:[%s4927_s14 + $0x1] ss:$0 sm:$0xff] }
 0x3a8   :  { %606 = vmax.xlane.f32.xlu0 %v605_v41  ;;  %v3707_v42 = vpop.f32.mrf.mxu0  ;;  %v598_v43 = vpop.f32.mrf.mxu1 }
 0x3a9   :  { %v602_v44 = vsel %vm601_vm4, %v550_v40, -inf }
 0x3aa   :  { %v3714_v45 = vpop.f32.mrf.mxu1  ;;  %603 = vmax.xlane.f32.xlu1 %v602_v44  ;;  %v552_v46 = vpop.f32.mrf.mxu0 }
 0x3ac   :  { %v3708_v47 = vpop.f32.mrf.mxu0 }
 0x431   :  { %v607_v48 = vpop.xlane.xlu0 %606 }
 0x432   :  { %v609_v49 = vsub.f32 %v596_v33, %v607_v48 }
 0x433   :  { %v604_v50 = vpop.xlane.xlu1 %603 }
 0x434   :  { %v612_v51 = vmul.f32 1.442695, %v609_v49  ;;  %v608_v52 = vsub.f32 %v550_v40, %v604_v50 }
 0x436   :  { %4047 = vpow2.f32 %v612_v51  ;;  %v610_v53 = vmul.f32 1.442695, %v608_v52 }
 0x438   :  { %4049 = vpow2.f32 %v610_v53 }
 0x443   :  { %v4048_v54 = vpop.eup %4047 }
 0x444   :  { %v617_v55 = vsel %vm601_vm4, %v4048_v54, 0.0 }
 0x445   :  { %v4050_v56 = vpop.eup %4049  ;;  %618 = vadd.xlane.f32.xlu0 %v617_v55 }
 0x446   :  { %v614_v57 = vsel %vm601_vm4, %v4050_v56, 0.0 }
 0x447   :  { %615 = vadd.xlane.f32.xlu1 %v614_v57 }
 0x4ce   :  { %v619_v58 = vpop.xlane.xlu0 %618 }
 0x4cf   :  { %4051 = vrcp.f32 %v619_v58 }
 0x4d0   :  { %v616_v61 = vpop.xlane.xlu1 %615 }
 0x4d1   :  { %4053 = vrcp.f32 %v616_v61 }
 0x4dc   :  { %v4052_v0 = vpop.eup %4051 }
 0x4dd   :  { %v623_v1 = vmul.f32 %v4052_v0, %v4048_v54 }
 0x4de   :  { %v4054_v2 = vpop.eup %4053 }
 0x4df   :  { %v625_v4 = vpack.c.bf16 %v623_v1, %v623_v1  ;;  %v622_v5 = vmul.f32 %v4054_v2, %v4050_v56 }
 0x4e1   :  { %3724 = vmatmul.mubr.msk.bf16.vlgmr.msra.gmra.mxu1 %vm601_vm4, %v625_v4  ;;  %v624_v7 = vpack.c.bf16 %v622_v5, %v622_v5 }
 0x4e2   :  { %3736 = vmatpush3.bf16.msra.mxu1 %v4001_v3  ;;  %3739 = vmatprep.mubr.msk.bf16.mxu1 %vm4111_vm1, %v4110_v15 }
 0x4e3   :  { %3718 = vmatmul.mubr.msk.bf16.vlgmr.msra.gmra.mxu0 %vm601_vm4, %v624_v7  ;;  %3737 = vmatprep.subr.bf16.mxu1 %v4110_v15 }
 0x4e4   :  { %3728 = vmatpush3.bf16.msra.mxu0 %v4002_v6  ;;  %3731 = vmatprep.mubr.msk.bf16.mxu0 %vm4111_vm1, %v4110_v15 }
 0x4e5   :  { %3729 = vmatprep.subr.bf16.mxu0 %v4110_v15 }
 0x4e6   :  { %3738 = vmatpush3.bf16.msra.mxu1 %v4003_v8 }
 0x4e7   :  { %3751 = vmatprep.subr.mxu1 %v4266_v19 }
 0x4e8   :  { %3730 = vmatpush3.bf16.msra.mxu0 %v4004_v9 }
 0x4e9   :  { %3740 = vmatmul.mubr.msk.bf16.vlgmr.msra.gmra.mxu1 %vm86_vm0, %v4284_v37  ;;  %3743 = vmatprep.subr.bf16.mxu0 %v4110_v15 }
 0x4ea   :  { %3752 = vmatpush3.msra.mxu1 %v4266_v19 }
 0x4eb   :  { %3732 = vmatmul.mubr.msk.bf16.vlgmr.msra.gmra.mxu0 %vm86_vm0, %v4284_v37  ;;  %3753 = vmatprep.subr.mxu1 %v4305_v39 }
 0x4ec   :  { %3744 = vmatpush3.bf16.msra.mxu0 %v4005_v10  ;;  %3747 = vmatprep.mubr.msk.bf16.mxu0 %vm4111_vm1, %v4110_v15 }
 0x4ed   :  { %3745 = vmatprep.subr.bf16.mxu0 %v4110_v15  ;;  %3754 = vmatpush3.msra.mxu1 %v4305_v39 }
 0x4ee   :  { %3765 = vmatprep.subr.bf16.mxu1 %v4110_v15 }
 0x4f0   :  { %3746 = vmatpush3.bf16.msra.mxu0 %v4006_v11 }
 0x4f1   :  { %3758 = vmatprep.subr.mxu0 %v4266_v19 }
 0x4f3   :  { %3748 = vmatmul.mubr.msk.bf16.vlgmr.msra.gmra.mxu0 %vm86_vm0, %v4284_v37 }
 0x4f4   :  { %3759 = vmatpush3.msra.mxu0 %v4266_v19  ;;  %v3365_v19 = vld [vmem:[%s4924_s13 + $0x1] ss:$0 sm:$0xff] }
 0x4f5   :  { %3760 = vmatprep.subr.mxu0 %v4305_v39 }
 0x4f6   :  { %3761 = vmatpush3.msra.mxu0 %v4305_v39 }
 0x4f7   :  { %3783 = vmatprep.subr.bf16.mxu0 %v4110_v15 }
 0x5a1   :  { %v4428_v12 = vpop.f32.mrf.mxu1 }
 0x5a3   :  { %v4430_v13 = vpop.f32.mrf.mxu0  ;;  %v3725_v14 = vpop.f32.mrf.mxu1 }
 0x5a4   :  { %v719_v16 = vpack.c.bf16 %v4428_v12, %v4430_v13 }
 0x5a5   :  { %v3719_v17 = vpop.f32.mrf.mxu0  ;;  %v716_v18 = vpop.f32.mrf.mxu1 }
 0x5a7   :  { %v670_v20 = vpop.f32.mrf.mxu0  ;;  %v3726_v37 = vpop.f32.mrf.mxu1 }
 0x5a9   :  { %v3720_v21 = vpop.f32.mrf.mxu0  ;;  %v847_v39 = vpop.f32.mrf.mxu1 }
 0x5aa   :  { %v848_v23 = vadd.f32 %v3365_v19, %v847_v39 }
 0x5ab   :  { %v781_v24 = vpop.f32.mrf.mxu0  ;;  %v3741_v25 = vpop.f32.mrf.mxu1 }
 0x5ac   :  { %v782_v26 = vadd.f32 %v3356_v22, %v781_v24  ;;  %3762 = vmatprep.mubr.msk.f32.mxu0 %vm328_vm2, %v848_v23  ;;  %v1007_v51 = vmul.f32 %v848_v23, %v4339_v62 }
 0x5ad   :  { %v3733_v27 = vpop.f32.mrf.mxu0  ;;  %v850_v28 = vpop.f32.mrf.mxu1 }
 0x5ae   :  { %v851_v29 = vadd.f32 %v3365_v19, %v850_v28  ;;  %3755 = vmatprep.mubr.msk.f32.mxu1 %vm328_vm2, %v782_v26  ;;  %v920_v54 = vmul.f32 %v782_v26, %v4339_v62 }
 0x5af   :  { %v784_v30 = vpop.f32.mrf.mxu0  ;;  %v3742_v32 = vpop.f32.mrf.mxu1 }
 0x5b0   :  { %v785_v33 = vadd.f32 %v3356_v22, %v784_v30  ;;  %3763 = vmatmul.mubr.msk.f32.vlgmr.msra.gmra.mxu0 %vm328_vm2, %v851_v29  ;;  %v1008_v58 = vmul.f32 %v851_v29, %v4329_v59 }
 0x5b1   :  { %v3734_v36 = vpop.f32.mrf.mxu0  ;;  %3785 = vmatprep.mubr.msk.bf16.mxu0 %vm4111_vm1, %v4110_v15 }
 0x5b2   :  { %3756 = vmatmul.mubr.msk.f32.vlgmr.msra.gmra.mxu1 %vm328_vm2, %v785_v33  ;;  %v921_v62 = vmul.f32 %v785_v33, %v4329_v59 }
 0x5b3   :  { %v913_v40 = vpop.f32.mrf.mxu0  ;;  %3767 = vmatprep.mubr.msk.bf16.mxu1 %vm4111_vm1, %v4110_v15 }
 0x5b4   :  { %v914_v41 = vadd.f32 %v3374_v38, %v913_v40 }
 0x5b5   :  { %v3749_v42 = vpop.f32.mrf.mxu0 }
 0x5b7   :  { %v916_v43 = vpop.f32.mrf.mxu0 }
 0x5b8   :  { %v917_v44 = vadd.f32 %v3374_v38, %v916_v43 }
 0x5b9   :  { %v3750_v45 = vpop.f32.mrf.mxu0 }
 0x5ba   :  { %v1101_v46 = vpack.c.bf16 %v917_v44, %v917_v44  ;;  %v4007_v45 = vld [vmem:[%s4929_s15] sm:$0xff]  }
 0x5bc   :  { %v1268_v47 = vsel %vm629_vm3, %v1101_v46, 0 }
 0x5bd   :  { %3784 = vmatpush3.bf16.msra.mxu0 %v1268_v47  ;;  %v4008_v47 = vld [vmem:[%s4929_s15 + $0x8] sm:$0xff]  }
 0x5be   :  { %3795 = vmatprep.subr.bf16.mxu0 %v4110_v15 }
 0x670   :  { %v3764_v48 = vpop.f32.mrf.mxu0 }
 0x671   :  { %v1091_v55 = vmul.f32 %v3764_v48, %v4334_v60 }
 0x672   :  { %v3757_v49 = vpop.f32.mrf.mxu1  ;;  %v1081_v50 = vpop.f32.mrf.mxu0 }
 0x673   :  { %v1090_v52 = vmul.f32 %v1081_v50, %v4344_v63  ;;  %v1093_v1 = vadd.f32 %v1091_v55, %v1008_v58  ;;  %v1004_v3 = vmul.f32 %v3757_v49, %v4334_v60  ;;  %v1100_v60 = vpack.c.bf16 %v914_v41, %v914_v41 }
 0x674   :  { %v994_v53 = vpop.f32.mrf.mxu1 }
 0x675   :  { %v1092_v56 = vadd.f32 %v1090_v52, %v1007_v51  ;;  %v1003_v57 = vmul.f32 %v994_v53, %v4344_v63  ;;  %v1099_v5 = vpack.c.bf16 %v1093_v1, %v1093_v1  ;;  %v1006_v6 = vadd.f32 %v1004_v3, %v921_v62 }
 0x676   :  { %v1222_v10 = vsel %vm629_vm3, %v1100_v60, 0 }
 0x677   :  { %v1098_v61 = vpack.c.bf16 %v1092_v56, %v1092_v56  ;;  %v1005_v0 = vadd.f32 %v1003_v57, %v920_v54  ;;  %v1152_v63 = vsel %vm328_vm2, %v1099_v5, 0  ;;  %v1095_v8 = vmul.f32 0.25, %v1006_v6 }
 0x678   :  { %v1415_v5 = vmul.f32 2.0, %v4277_v35 }
 0x679   :  { %v1106_v2 = vsel %vm328_vm2, %v1098_v61, 0  ;;  %v1094_v4 = vmul.f32 0.25, %v1005_v0  ;;  %v1097_v9 = vpack.c.bf16 %v1095_v8, %v1095_v8  ;;  %v1414_v0 = vmul.f32 2.0, %v4275_v34 }
 0x67a   :  { %3766 = vmatpush3.bf16.xpose.msra.mxu1 %v1106_v2  ;;  %v3392_v2 = vld [vmem:[%s4930_s16] ss:$0 sm:$0xff] }
 0x67b   :  { %3771 = vmatprep.subr.bf16.mxu1 %v4110_v15  ;;  %v1096_v7 = vpack.c.bf16 %v1094_v4, %v1094_v4 }
 0x681   :  { %3768 = vmatmul.mubr.msk.bf16.vlgmr.msra.gmra.mxu1 %vm328_vm2, %v1096_v7 }
 0x682   :  { %3772 = vmatpush3.bf16.xpose.msra.mxu1 %v1152_v63  ;;  %3773 = vmatprep.mubr.msk.bf16.mxu1 %vm4111_vm1, %v4110_v15 }
 0x683   :  { %3777 = vmatprep.subr.bf16.mxu1 %v4110_v15 }
 0x689   :  { %3774 = vmatmul.mubr.msk.bf16.vlgmr.msra.gmra.mxu1 %vm328_vm2, %v1097_v9 }
 0x68a   :  { %3778 = vmatpush3.bf16.msra.mxu1 %v1222_v10  ;;  %3779 = vmatprep.mubr.msk.bf16.mxu1 %vm4111_vm1, %v4110_v15 }
 0x68b   :  { %3789 = vmatprep.subr.bf16.mxu1 %v4110_v15 }
 0x741   :  { %v1142_v59 = vpop.f32.mrf.mxu1 }
 0x742   :  { %v1143_v11 = vadd.f32 %v1142_v59, %v4374_v31 }
 0x743   :  { %v3769_v14 = vpop.f32.mrf.mxu1 }
 0x744   :  { %v1194_v17 = vsel %vm601_vm4, %v1143_v11, -inf }
 0x745   :  { %1195 = vmax.xlane.f32.xlu0 %v1194_v17  ;;  %v1145_v18 = vpop.f32.mrf.mxu1 }
 0x747   :  { %v3770_v20 = vpop.f32.mrf.mxu1 }
 0x749   :  { %v1188_v37 = vpop.f32.mrf.mxu1 }
 0x74a   :  { %v1189_v19 = vadd.f32 %v1188_v37, %v4374_v31 }
 0x74b   :  { %v3775_v21 = vpop.f32.mrf.mxu1 }
 0x74c   :  { %v1197_v39 = vsel %vm601_vm4, %v1189_v19, -inf  ;;  %v4010_v21 = vld [vmem:[%s4931_s17] sm:$0xff]  }
 0x74d   :  { %1198 = vmax.xlane.f32.xlu1 %v1197_v39  ;;  %v1191_v22 = vpop.f32.mrf.mxu1 }
 0x74f   :  { %v3776_v23 = vpop.f32.mrf.mxu1 }
 0x7ce   :  { %v1196_v24 = vpop.xlane.xlu0 %1195 }
 0x7cf   :  { %v1200_v25 = vsub.f32 %v1143_v11, %v1196_v24 }
 0x7d1   :  { %v1202_v26 = vmul.f32 1.442695, %v1200_v25 }
 0x7d3   :  { %4055 = vpow2.f32 %v1202_v26 }
 0x7d6   :  { %v1199_v27 = vpop.xlane.xlu1 %1198 }
 0x7d7   :  { %v1201_v28 = vsub.f32 %v1189_v19, %v1199_v27  ;;  %v4009_v19 = vld [vmem:[%s4931_s17 + $0x8] sm:$0xff]  }
 0x7d9   :  { %v1204_v29 = vmul.f32 1.442695, %v1201_v28 }
 0x7db   :  { %4057 = vpow2.f32 %v1204_v29  ;;  %v3393_v29 = vld [vmem:[%s4932_s7] ss:$0 sm:$0xff] }
 0x7e0   :  { %v4056_v30 = vpop.eup %4055 }
 0x7e1   :  { %v1206_v32 = vsel %vm601_vm4, %v4056_v30, 0.0 }
 0x7e2   :  { %1207 = vadd.xlane.f32.xlu0 %v1206_v32 }
 0x7e8   :  { %v4058_v33 = vpop.eup %4057 }
 0x7e9   :  { %v1209_v31 = vsel %vm601_vm4, %v4058_v33, 0.0 }
 0x7ea   :  { %1210 = vadd.xlane.f32.xlu1 %v1209_v31  ;;  %v3394_v31 = vld [vmem:[%s4933_s8] ss:$0 sm:$0xff] }
 0x86b   :  { %v1208_v36 = vpop.xlane.xlu0 %1207 }
 0x86c   :  { %4059 = vrcp.f32 %v1208_v36 }
 0x873   :  { %v1211_v38 = vpop.xlane.xlu1 %1210 }
 0x874   :  { %4061 = vrcp.f32 %v1211_v38 }
 0x879   :  { %v4060_v40 = vpop.eup %4059 }
 0x87a   :  { %v1214_v41 = vmul.f32 %v4060_v40, %v4056_v30 }
 0x87c   :  { %v1216_v42 = vpack.c.bf16 %v1214_v41, %v1214_v41 }
 0x87e   :  { %3780 = vmatmul.mubr.msk.bf16.vlgmr.msra.gmra.mxu1 %vm601_vm4, %v1216_v42  ;;  %v4011_v42 = vld [vmem:[%s4934_s19 + $0x38] sm:$0xff]  }
 0x87f   :  { %3791 = vmatprep.mubr.msk.bf16.mxu1 %vm4111_vm1, %v4110_v15  ;;  %3790 = vmatpush3.bf16.msra.mxu1 %v4008_v47  ;;  %v4016_v47 = vld [vmem:[%s4934_s19 + $0x10] sm:$0xff]  }
 0x880   :  { %3801 = vmatprep.subr.bf16.mxu1 %v4110_v15 }
 0x881   :  { %v4062_v43 = vpop.eup %4061 }
 0x882   :  { %v1215_v44 = vmul.f32 %v4062_v43, %v4058_v33  ;;  %v4012_v43 = vld [vmem:[%s4934_s19 + $0x30] sm:$0xff]  }
 0x884   :  { %v1217_v46 = vpack.c.bf16 %v1215_v44, %v1215_v44  ;;  %v4013_v44 = vld [vmem:[%s4934_s19 + $0x28] sm:$0xff]  }
 0x886   :  { %3786 = vmatmul.mubr.msk.bf16.vlgmr.msra.gmra.mxu0 %vm601_vm4, %v1217_v46  ;;  %v4015_v46 = vld [vmem:[%s4934_s19 + $0x18] sm:$0xff]  }
 0x887   :  { %3796 = vmatpush3.bf16.msra.mxu0 %v4007_v45  ;;  %3797 = vmatprep.mubr.msk.bf16.mxu0 %vm4111_vm1, %v4110_v15  ;;  %v4014_v45 = vld [vmem:[%s4934_s19 + $0x20] sm:$0xff]  }
 0x888   :  { %3809 = vmatprep.subr.bf16.mxu0 %v4110_v15 }
 0x88e   :  { %3798 = vmatmul.mubr.msk.bf16.vlgmr.msra.gmra.mxu0 %vm328_vm2, %v719_v16 }
 0x88f   :  { %3825 = vmatprep.mubr.msk.bf16.mxu0 %vm4111_vm1, %v4110_v15  ;;  %3810 = vmatpush3.bf16.msra.mxu0 %v4011_v42 }
 0x890   :  { %3811 = vmatprep.subr.bf16.mxu0 %v4110_v15 }
 0x893   :  { %3812 = vmatpush3.bf16.msra.mxu0 %v4012_v43 }
 0x894   :  { %3813 = vmatprep.subr.bf16.mxu0 %v4110_v15 }
 0x897   :  { %3814 = vmatpush3.bf16.msra.mxu0 %v4013_v44 }
 0x898   :  { %3815 = vmatprep.subr.bf16.mxu0 %v4110_v15 }
 0x89b   :  { %3816 = vmatpush3.bf16.msra.mxu0 %v4014_v45 }
 0x89c   :  { %3817 = vmatprep.subr.bf16.mxu0 %v4110_v15 }
 0x89f   :  { %3818 = vmatpush3.bf16.msra.mxu0 %v4015_v46  ;;  %v3410_v46 = vld [vmem:[%s4960_s9 + $0x1] ss:$0 sm:$0xff] }
 0x8a0   :  { %3819 = vmatprep.subr.bf16.mxu0 %v4110_v15 }
 0x8a3   :  { %3820 = vmatpush3.bf16.msra.mxu0 %v4016_v47 }
 0x8a4   :  { %3821 = vmatprep.subr.bf16.mxu0 %v4110_v15 }
 0x93e   :  { %v1258_v48 = vpop.f32.mrf.mxu1 }
 0x940   :  { %v3781_v49 = vpop.f32.mrf.mxu1 }
 0x941   :  { %v4018_v49 = vld [vmem:[%s4934_s19] sm:$0xff]  }
 0x942   :  { %v1261_v50 = vpop.f32.mrf.mxu1 }
 0x943   :  { %v3395_v50 = vld [vmem:[%s4935_s18] ss:$0 sm:$0xff] }
 0x944   :  { %v3782_v51 = vpop.f32.mrf.mxu1 }
 0x946   :  { %v1304_v52 = vpop.f32.mrf.mxu0 }
 0x947   :  { %v1310_v53 = vpack.c.bf16 %v1304_v52, %v1258_v48  ;;  %v4017_v48 = vld [vmem:[%s4934_s19 + $0x8] sm:$0xff]  }
 0x948   :  { %v3787_v54 = vpop.f32.mrf.mxu0  ;;  %3822 = vmatpush3.bf16.msra.mxu0 %v4017_v48 }
 0x949   :  { %3792 = vmatmul.mubr.msk.bf16.vlgmr.msra.gmra.mxu1 %vm328_vm2, %v1310_v53  ;;  %3823 = vmatprep.subr.bf16.mxu0 %v4110_v15 }
 0x94a   :  { %v1307_v12 = vpop.f32.mrf.mxu0  ;;  %3805 = vmatprep.mubr.msk.bf16.mxu1 %vm4111_vm1, %v4110_v15  ;;  %3802 = vmatpush3.bf16.msra.mxu1 %v4009_v19 }
 0x94b   :  { %3803 = vmatprep.subr.bf16.mxu1 %v4110_v15 }
 0x94c   :  { %v3788_v13 = vpop.f32.mrf.mxu0  ;;  %3824 = vmatpush3.bf16.msra.mxu0 %v4018_v49 }
 0x94d   :  { %3873 = vmatprep.subr.bf16.mxu0 %v4110_v15 }
 0x94e   :  { %v1407_v16 = vpop.f32.mrf.mxu0  ;;  %3804 = vmatpush3.bf16.msra.mxu1 %v4010_v21 }
 0x94f   :  { %3829 = vmatprep.subr.bf16.mxu1 %v4110_v15 }
 0x950   :  { %v3799_v55 = vpop.f32.mrf.mxu0 }
 0x952   :  { %v1410_v56 = vpop.f32.mrf.mxu0 }
 0x954   :  { %v3800_v57 = vpop.f32.mrf.mxu0 }
 0xa09   :  { %v1357_v58 = vpop.f32.mrf.mxu1 }
 0xa0a   :  { %v1408_v61 = vadd.f32 %v1407_v16, %v1357_v58 }
 0xa0b   :  { %v3793_v1 = vpop.f32.mrf.mxu1 }
 0xa0c   :  { %v1416_v3 = vadd.f32 %v1414_v0, %v1408_v61 }
 0xa0d   :  { %v1360_v4 = vpop.f32.mrf.mxu1 }
 0xa0e   :  { %v1411_v62 = vadd.f32 %v1410_v56, %v1360_v4  ;;  %v1425_v6 = vadd.f32 %v3392_v2, %v1416_v3 }
 0xa0f   :  { %v3794_v7 = vpop.f32.mrf.mxu1 }
 0xa10   :  { %v1417_v63 = vadd.f32 %v1415_v5, %v1411_v62  ;;  %v1429_v8 = vsel %vm86_vm0, %v1425_v6, 0.0 }
 0xa11   :  { %1430 = vadd.xlane.f32.xlu0 %v1429_v8 }
 0xa12   :  { %v1426_v60 = vadd.f32 %v3392_v2, %v1417_v63 }
 0xa14   :  { %v1432_v9 = vsel %vm86_vm0, %v1426_v60, 0.0 }
 0xa15   :  { %1433 = vadd.xlane.f32.xlu1 %v1432_v9 }
 0xa9a   :  { %v1431_v34 = vpop.xlane.xlu0 %1430 }
 0xa9b   :  { %v1435_v10 = vmul.f32 0.03125, %v1431_v34  ;;  %v3399_v34 = vld [vmem:[%s4936_s20] ss:$0 sm:$0xff] }
 0xa9d   :  { %v1437_v59 = vsub.f32 %v1425_v6, %v1435_v10 }
 0xa9e   :  { %v1434_v11 = vpop.xlane.xlu1 %1433 }
 0xa9f   :  { %v1436_v14 = vmul.f32 0.03125, %v1434_v11  ;;  %v1439_v17 = vmul.f32 %v1437_v59, %v1437_v59 }
 0xaa1   :  { %v1438_v18 = vsub.f32 %v1426_v60, %v1436_v14  ;;  %v1441_v20 = vsel %vm86_vm0, %v1439_v17, 0.0 }
 0xaa2   :  { %1442 = vadd.xlane.f32.xlu0 %v1441_v20 }
 0xaa3   :  { %v1440_v35 = vmul.f32 %v1438_v18, %v1438_v18 }
 0xaa5   :  { %v1444_v37 = vsel %vm86_vm0, %v1440_v35, 0.0 }
 0xaa6   :  { %1445 = vadd.xlane.f32.xlu1 %v1444_v37 }
 0xb2b   :  { %v1443_v39 = vpop.xlane.xlu0 %1442 }
 0xb2c   :  { %v1447_v22 = vmul.f32 0.03125, %v1443_v39 }
 0xb2e   :  { %v1449_v23 = vadd.f32 1e-05, %v1447_v22 }
 0xb2f   :  { %v1446_v24 = vpop.xlane.xlu1 %1445 }
 0xb30   :  { %4063 = vrsqrt.f32 %v1449_v23  ;;  %v1448_v25 = vmul.f32 0.03125, %v1446_v24 }
 0xb32   :  { %v1450_v26 = vadd.f32 1e-05, %v1448_v25 }
 0xb34   :  { %4065 = vrsqrt.f32 %v1450_v26 }
 0xb3d   :  { %v4064_v27 = vpop.eup %4063 }
 0xb3e   :  { %v1453_v28 = vmul.f32 %v4064_v27, %v1437_v59 }
 0xb40   :  { %v1461_v33 = vmul.f32 %v3393_v29, %v1453_v28 }
 0xb41   :  { %v4066_v30 = vpop.eup %4065 }
 0xb42   :  { %v1454_v32 = vmul.f32 %v4066_v30, %v1438_v18  ;;  %v4525_v38 = vadd.f32 %v3394_v31, %v1461_v33  ;;  %v4019_v33 = vld [vmem:[%s4957_s26 + $0x28] sm:$0xff]  }
 0xb44   :  { %v1462_v36 = vmul.f32 %v3393_v29, %v1454_v32  ;;  %v1670_v11 = vmul.f32 2.0, %v4525_v38 }
 0xb46   :  { %v4527_v40 = vadd.f32 %v3394_v31, %v1462_v36  ;;  %v4020_v31 = vld [vmem:[%s4957_s26 + $0x20] sm:$0xff]  }
 0xb48   :  { %v1471_v41 = vpack.c.bf16 %v4527_v40, %v4525_v38  ;;  %v1671_v37 = vmul.f32 2.0, %v4527_v40 }
 0xb4a   :  { %3806 = vmatmul.mubr.msk.bf16.vlgmr.msra.gmra.mxu1 %vm86_vm0, %v1471_v41 }
 0xb4b   :  { %3833 = vmatprep.mubr.msk.bf16.mxu1 %vm4111_vm1, %v4110_v15  ;;  %3830 = vmatpush3.bf16.msra.mxu1 %v4019_v33  ;;  %v3435_v33 = vld [vmem:[%s4927_s14 + $0x2] ss:$0 sm:$0xff] }
 0xb4c   :  { %3831 = vmatprep.subr.bf16.mxu1 %v4110_v15 }
 0xb4f   :  { %3832 = vmatpush3.bf16.msra.mxu1 %v4020_v31 }
 0xb50   :  { %3837 = vmatprep.subr.bf16.mxu1 %v4110_v15 }
 0xc0a   :  { %v1532_v51 = vpop.f32.mrf.mxu1 }
 0xc0b   :  { %v1533_v52 = vadd.f32 %v3395_v50, %v1532_v51 }
 0xc0c   :  { %v3807_v53 = vpop.f32.mrf.mxu1 }
 0xc0d   :  { %v1543_v54 = vmul.f32 0.044715, %v1533_v52  ;;  %v1541_v56 = vmul.f32 0.7978846, %v1533_v52  ;;  %v1539_v6 = vmul.f32 0.5, %v1533_v52 }
 0xc0e   :  { %v1535_v12 = vpop.f32.mrf.mxu1 }
 0xc0f   :  { %v1545_v13 = vmul.f32 %v1543_v54, %v1533_v52  ;;  %v1536_v16 = vadd.f32 %v3395_v50, %v1535_v12  ;;  %v3411_v50 = vld [vmem:[%s4961_s27 + $0x1] ss:$0 sm:$0xff]  ;;  %v4021_v54 = vld [vmem:[%s4958_s12 + $0x28] sm:$0xff]  }
 0xc10   :  { %v3808_v55 = vpop.f32.mrf.mxu1 }
 0xc11   :  { %v1547_v57 = vadd.f32 1.0, %v1545_v13  ;;  %v1544_v58 = vmul.f32 0.044715, %v1536_v16  ;;  %v1542_v1 = vmul.f32 0.7978846, %v1536_v16  ;;  %v1540_v7 = vmul.f32 0.5, %v1536_v16 }
 0xc12   :  { %v4022_v13 = vld [vmem:[%s4958_s12 + $0x20] sm:$0xff]  }
 0xc13   :  { %v1549_v61 = vmul.f32 %v1547_v57, %v1541_v56  ;;  %v1546_v0 = vmul.f32 %v1544_v58, %v1536_v16  ;;  %v4023_v16 = vld [vmem:[%s4962_s11 + $0x28] sm:$0xff]   ;;  %v4024_v55 = vld [vmem:[%s4962_s11 + $0x20] sm:$0xff]  }
 0xc14   :  { %v4628_v56 = vld [vmem:[%s4959_s24 + $0x8] sm:$0xff]  ;;  %v4637_v57 = vld [vmem:[%s4959_s24] sm:$0xff] }
 0xc15   :  { %4067 = vtanh.f32 %v1549_v61  ;;  %v1548_v2 = vadd.f32 1.0, %v1546_v0  ;;  %v3417_v58 = vld [vmem:[%s4963_s10 + $0x2] ss:$0 sm:$0xff] }
 0xc17   :  { %v1550_v3 = vmul.f32 %v1548_v2, %v1542_v1 }
 0xc19   :  { %4069 = vtanh.f32 %v1550_v3 }
 0xc22   :  { %v4068_v4 = vpop.eup %4067 }
 0xc23   :  { %v1553_v62 = vadd.f32 1.0, %v4068_v4 }
 0xc25   :  { %v1555_v8 = vmul.f32 %v1553_v62, %v1539_v6  ;;  %v3426_v62 = vld [vmem:[%s4924_s13 + $0x2] ss:$0 sm:$0xff] }
 0xc26   :  { %v4070_v5 = vpop.eup %4069 }
 0xc27   :  { %v1554_v63 = vadd.f32 1.0, %v4070_v5 }
 0xc29   :  { %v1556_v60 = vmul.f32 %v1554_v63, %v1540_v7 }
 0xc2b   :  { %v1557_v9 = vpack.c.bf16 %v1556_v60, %v1555_v8 }
 0xc2d   :  { %3826 = vmatmul.mubr.bf16.vlgmr.msra.gmra.mxu0 %v1557_v9 }
 0xc2e   :  { %3875 = vmatprep.mubr.msk.bf16.mxu0 %vm4111_vm1, %v4110_v15 }
 0xced   :  { %v1663_v10 = vpop.f32.mrf.mxu0 }
 0xcee   :  { %v1664_v59 = vadd.f32 %v3399_v34, %v1663_v10 }
 0xcef   :  { %v3827_v14 = vpop.f32.mrf.mxu0 }
 0xcf0   :  { %v1672_v17 = vadd.f32 %v1670_v11, %v1664_v59 }
 0xcf1   :  { %v1666_v18 = vpop.f32.mrf.mxu0 }
 0xcf2   :  { %v1667_v20 = vadd.f32 %v3399_v34, %v1666_v18  ;;  %v1678_v35 = vsel %vm86_vm0, %v1672_v17, 0.0  ;;  %v4661_v18 = vld [vmem:[%s4926_s1 + $0x8] sm:$0xff] }
 0xcf3   :  { %1679 = vadd.xlane.f32.xlu0 %v1678_v35  ;;  %v3828_v19 = vpop.f32.mrf.mxu0  ;;  %v4667_v35 = vld [vmem:[%s4925_s2 + $0x8] sm:$0xff] }
 0xcf4   :  { %v1673_v21 = vadd.f32 %v1671_v37, %v1667_v20 }
 0xcf6   :  { %v1681_v39 = vsel %vm86_vm0, %v1673_v21, 0.0 }
 0xcf7   :  { %1682 = vadd.xlane.f32.xlu1 %v1681_v39 }
 0xd7c   :  { %v1680_v22 = vpop.xlane.xlu0 %1679 }
 0xd7d   :  { %v1684_v23 = vmul.f32 0.03125, %v1680_v22  ;;  %v4675_v22 = vld [vmem:[%s4926_s1] sm:$0xff] }
 0xd7f   :  { %v1686_v24 = vsub.f32 %v1672_v17, %v1684_v23 }
 0xd80   :  { %v1683_v25 = vpop.xlane.xlu1 %1682 }
 0xd81   :  { %v1685_v26 = vmul.f32 0.03125, %v1683_v25  ;;  %v1688_v27 = vmul.f32 %v1686_v24, %v1686_v24 }
 0xd83   :  { %v1687_v28 = vsub.f32 %v1673_v21, %v1685_v26  ;;  %v1690_v29 = vsel %vm86_vm0, %v1688_v27, 0.0 }
 0xd84   :  { %1691 = vadd.xlane.f32.xlu0 %v1690_v29 }
 0xd85   :  { %v1689_v30 = vmul.f32 %v1687_v28, %v1687_v28 }
 0xd87   :  { %v1693_v32 = vsel %vm86_vm0, %v1689_v30, 0.0 }
 0xd88   :  { %1694 = vadd.xlane.f32.xlu1 %v1693_v32 }
 0xe0d   :  { %v1692_v36 = vpop.xlane.xlu0 %1691 }
 0xe0e   :  { %v1696_v38 = vmul.f32 0.03125, %v1692_v36 }
 0xe10   :  { %v1698_v40 = vadd.f32 1e-05, %v1696_v38 }
 0xe11   :  { %v1695_v41 = vpop.xlane.xlu1 %1694 }
 0xe12   :  { %4071 = vrsqrt.f32 %v1698_v40  ;;  %v1697_v42 = vmul.f32 0.03125, %v1695_v41 }
 0xe14   :  { %v1699_v43 = vadd.f32 1e-05, %v1697_v42 }
 0xe16   :  { %4073 = vrsqrt.f32 %v1699_v43 }
 0xe1f   :  { %v4072_v44 = vpop.eup %4071 }
 0xe20   :  { %v1702_v45 = vmul.f32 %v4072_v44, %v1686_v24  ;;  %v4681_v24 = vld [vmem:[%s4925_s2] sm:$0xff] }
 0xe22   :  { %v1710_v48 = vmul.f32 %v3410_v46, %v1702_v45 }
 0xe23   :  { %v4074_v47 = vpop.eup %4073 }
 0xe24   :  { %v1703_v49 = vmul.f32 %v4074_v47, %v1687_v28  ;;  %v4594_v52 = vadd.f32 %v3411_v50, %v1710_v48 }
 0xe26   :  { %v1711_v51 = vmul.f32 %v3410_v46, %v1703_v49 }
 0xe28   :  { %v4596_v53 = vadd.f32 %v3411_v50, %v1711_v51 }
 0xe2a   :  { %v4603_v12 = vpack.c.bf16 %v4596_v53, %v4594_v52 }
 0xe2c   :  { %3834 = vmatmul.mubr.msk.bf16.vlgmr.msra.gmra.mxu1 %vm86_vm0, %v4603_v12 }
 0xe2d   :  { %3838 = vmatpush3.bf16.msra.mxu1 %v4021_v54  ;;  %3841 = vmatprep.mubr.msk.bf16.mxu1 %vm4111_vm1, %v4110_v15  ;;  %v4706_v54 = vld [vmem:[%s4928_s4] sm:$0xff] }
 0xe2e   :  { %3839 = vmatprep.subr.bf16.mxu1 %v4110_v15 }
 0xe31   :  { %3840 = vmatpush3.bf16.msra.mxu1 %v4022_v13 }
 0xe32   :  { %3845 = vmatprep.subr.bf16.mxu1 %v4110_v15 }
 0xe34   :  { %3842 = vmatmul.mubr.msk.bf16.vlgmr.msra.gmra.mxu1 %vm86_vm0, %v4603_v12 }
 0xe35   :  { %3846 = vmatpush3.bf16.msra.mxu1 %v4023_v16  ;;  %3849 = vmatprep.mubr.msk.bf16.mxu1 %vm4111_vm1, %v4110_v15 }
 0xe36   :  { %3847 = vmatprep.subr.bf16.mxu1 %v4110_v15 }
 0xe39   :  { %3848 = vmatpush3.bf16.msra.mxu1 %v4024_v55 }
 0xe3a   :  { %3853 = vmatprep.subr.mxu1 %v4628_v56 }
 0xe3c   :  { %3850 = vmatmul.mubr.msk.bf16.vlgmr.msra.gmra.mxu1 %vm86_vm0, %v4603_v12 }
 0xe3d   :  { %3854 = vmatpush3.msra.mxu1 %v4628_v56 }
 0xe3e   :  { %3855 = vmatprep.subr.mxu1 %v4637_v57 }
 0xe3f   :  { %3856 = vmatpush3.msra.mxu1 %v4637_v57 }
 0xe40   :  { %3860 = vmatprep.subr.mxu1 %v4628_v56 }
 0xeec   :  { %v1783_v61 = vpop.f32.mrf.mxu1 }
 0xeed   :  { %v1784_v0 = vadd.f32 %v3417_v58, %v1783_v61 }
 0xeee   :  { %v3835_v1 = vpop.f32.mrf.mxu1 }
 0xeef   :  { %3857 = vmatprep.mubr.msk.f32.mxu1 %vm328_vm2, %v1784_v0  ;;  %v1922_v28 = vmul.f32 %v4675_v22, %v1784_v0 }
 0xef0   :  { %v1786_v2 = vpop.f32.mrf.mxu1 }
 0xef1   :  { %v1787_v3 = vadd.f32 %v3417_v58, %v1786_v2 }
 0xef2   :  { %v3836_v4 = vpop.f32.mrf.mxu1 }
 0xef3   :  { %3858 = vmatmul.mubr.msk.f32.vlgmr.msra.gmra.mxu1 %vm328_vm2, %v1787_v3  ;;  %v1923_v21 = vmul.f32 %v4661_v18, %v1787_v3 }
 0xef4   :  { %v1849_v5 = vpop.f32.mrf.mxu1  ;;  %3861 = vmatpush3.msra.mxu1 %v4628_v56 }
 0xef5   :  { %v1850_v6 = vadd.f32 %v3426_v62, %v1849_v5  ;;  %3862 = vmatprep.subr.mxu1 %v4637_v57 }
 0xef6   :  { %v3843_v7 = vpop.f32.mrf.mxu1  ;;  %3863 = vmatpush3.msra.mxu1 %v4637_v57 }
 0xef7   :  { %3864 = vmatprep.mubr.msk.f32.mxu1 %vm328_vm2, %v1850_v6  ;;  %3867 = vmatprep.subr.bf16.mxu1 %v4110_v15  ;;  %v2009_v23 = vmul.f32 %v4675_v22, %v1850_v6 }
 0xef8   :  { %v1852_v63 = vpop.f32.mrf.mxu1 }
 0xef9   :  { %v1853_v8 = vadd.f32 %v3426_v62, %v1852_v63 }
 0xefa   :  { %v3844_v60 = vpop.f32.mrf.mxu1 }
 0xefb   :  { %3865 = vmatmul.mubr.msk.f32.vlgmr.msra.gmra.mxu1 %vm328_vm2, %v1853_v8  ;;  %v2010_v20 = vmul.f32 %v4661_v18, %v1853_v8 }
 0xefc   :  { %v1915_v9 = vpop.f32.mrf.mxu1  ;;  %3869 = vmatprep.mubr.msk.bf16.mxu1 %vm4111_vm1, %v4110_v15 }
 0xefd   :  { %v1916_v41 = vadd.f32 %v3435_v33, %v1915_v9 }
 0xefe   :  { %v3851_v34 = vpop.f32.mrf.mxu1 }
 0xeff   :  { %v2102_v46 = vpack.c.bf16 %v1916_v41, %v1916_v41 }
 0xf00   :  { %v1918_v10 = vpop.f32.mrf.mxu1 }
 0xf01   :  { %v1919_v31 = vadd.f32 %v3435_v33, %v1918_v10  ;;  %v2226_v50 = vsel %vm629_vm3, %v2102_v46, 0 }
 0xf02   :  { %v3852_v59 = vpop.f32.mrf.mxu1 }
 0xf03   :  { %v2103_v44 = vpack.c.bf16 %v1919_v31, %v1919_v31 }
 0xf05   :  { %v2272_v48 = vsel %vm629_vm3, %v2103_v44, 0 }
 0xfb3   :  { %v3859_v11 = vpop.f32.mrf.mxu1 }
 0xfb4   :  { %v2006_v37 = vmul.f32 %v4667_v35, %v3859_v11 }
 0xfb5   :  { %v1996_v14 = vpop.f32.mrf.mxu1 }
 0xfb6   :  { %v2005_v25 = vmul.f32 %v4681_v24, %v1996_v14  ;;  %v2008_v29 = vadd.f32 %v2006_v37, %v1923_v21 }
 0xfb8   :  { %v2007_v36 = vadd.f32 %v2005_v25, %v1922_v28  ;;  %v2097_v42 = vmul.f32 0.125, %v2008_v29  ;;  %v4027_v28 = vld [vmem:[%s4958_s12 + $0x30] sm:$0xff]  }
 0xfb9   :  { %v4028_v29 = vld [vmem:[%s4957_s26 + $0x30] sm:$0xff]  }
 0xfba   :  { %v2096_v45 = vmul.f32 0.125, %v2007_v36  ;;  %v2099_v47 = vpack.c.bf16 %v2097_v42, %v2097_v42 }
 0xfbb   :  { %v3866_v17 = vpop.f32.mrf.mxu1 }
 0xfbc   :  { %v2093_v19 = vmul.f32 %v4667_v35, %v3866_v17  ;;  %v2098_v49 = vpack.c.bf16 %v2096_v45, %v2096_v45 }
 0xfbd   :  { %v2083_v39 = vpop.f32.mrf.mxu1 }
 0xfbe   :  { %v2095_v26 = vadd.f32 %v2093_v19, %v2010_v20  ;;  %v2092_v27 = vmul.f32 %v4681_v24, %v2083_v39  ;;  %v4025_v39 = vld [vmem:[%s4958_s12 + $0x38] sm:$0xff]  }
 0xfc0   :  { %v2101_v30 = vpack.c.bf16 %v2095_v26, %v2095_v26  ;;  %v2094_v32 = vadd.f32 %v2092_v27, %v2009_v23  ;;  %v4026_v26 = vld [vmem:[%s4957_s26 + $0x38] sm:$0xff]  }
 0xfc2   :  { %v2100_v38 = vpack.c.bf16 %v2094_v32, %v2094_v32  ;;  %v2154_v40 = vsel %vm328_vm2, %v2101_v30, 0  ;;  %v4029_v30 = vld [vmem:[%s4962_s11 + $0x38] sm:$0xff]   ;;  %v4030_v32 = vld [vmem:[%s4962_s11 + $0x30] sm:$0xff]  }
 0xfc3   :  { %3874 = vmatpush3.bf16.xpose.msra.mxu0 %v2154_v40 }
 0xfc4   :  { %v2108_v43 = vsel %vm328_vm2, %v2100_v38, 0  ;;  %3885 = vmatprep.subr.bf16.mxu0 %v4110_v15 }
 0xfc5   :  { %3868 = vmatpush3.bf16.xpose.msra.mxu1 %v2108_v43 }
 0xfc6   :  { %3879 = vmatprep.subr.bf16.mxu1 %v4110_v15 }
 0xfca   :  { %3876 = vmatmul.mubr.msk.bf16.vlgmr.msra.gmra.mxu0 %vm328_vm2, %v2099_v47 }
 0xfcb   :  { %3886 = vmatpush3.bf16.msra.mxu0 %v2272_v48  ;;  %3887 = vmatprep.mubr.msk.bf16.mxu0 %vm4111_vm1, %v4110_v15 }
 0xfcc   :  { %3870 = vmatmul.mubr.msk.bf16.vlgmr.msra.gmra.mxu1 %vm328_vm2, %v2098_v49  ;;  %3899 = vmatprep.subr.bf16.mxu0 %v4110_v15 }
 0xfcd   :  { %3880 = vmatpush3.bf16.msra.mxu1 %v2226_v50  ;;  %3881 = vmatprep.mubr.msk.bf16.mxu1 %vm4111_vm1, %v4110_v15 }
 0xfce   :  { %3891 = vmatprep.subr.bf16.mxu1 %v4110_v15 }
0x108a   :  { %v2190_v51 = vpop.f32.mrf.mxu0 }
0x108b   :  { %v2191_v13 = vadd.f32 %v4706_v54, %v2190_v51  ;;  %v3463_v51 = vld [vmem:[%s4924_s13 + $0x3] ss:$0 sm:$0xff] }
0x108c   :  { %v2144_v16 = vpop.f32.mrf.mxu1  ;;  %v3877_v55 = vpop.f32.mrf.mxu0 }
0x108d   :  { %v2197_v58 = vmul.f32 2.0, %v2191_v13  ;;  %v2145_v61 = vadd.f32 %v4706_v54, %v2144_v16 }
0x108e   :  { %v3871_v0 = vpop.f32.mrf.mxu1  ;;  %v2193_v1 = vpop.f32.mrf.mxu0 }
0x108f   :  { %v2196_v2 = vmul.f32 2.0, %v2145_v61  ;;  %v2201_v3 = vsel %vm601_vm4, %v2197_v58, -inf }
0x1090   :  { %2202 = vmax.xlane.f32.xlu1 %v2201_v3  ;;  %v2147_v4 = vpop.f32.mrf.mxu1  ;;  %v3878_v62 = vpop.f32.mrf.mxu0 }
0x1091   :  { %v2198_v5 = vsel %vm601_vm4, %v2196_v2, -inf }
0x1092   :  { %2199 = vmax.xlane.f32.xlu0 %v2198_v5  ;;  %v3872_v6 = vpop.f32.mrf.mxu1 }
0x1119   :  { %v2203_v7 = vpop.xlane.xlu1 %2202 }
0x111a   :  { %v2205_v63 = vsub.f32 %v2197_v58, %v2203_v7 }
0x111b   :  { %v2200_v8 = vpop.xlane.xlu0 %2199 }
0x111c   :  { %v2208_v60 = vmul.f32 1.442695, %v2205_v63  ;;  %v2204_v9 = vsub.f32 %v2196_v2, %v2200_v8 }
0x111e   :  { %4075 = vpow2.f32 %v2208_v60  ;;  %v2206_v34 = vmul.f32 1.442695, %v2204_v9 }
0x1120   :  { %4077 = vpow2.f32 %v2206_v34 }
0x112b   :  { %v4076_v10 = vpop.eup %4075 }
0x112c   :  { %v2213_v59 = vsel %vm601_vm4, %v4076_v10, 0.0 }
0x112d   :  { %v4078_v11 = vpop.eup %4077  ;;  %2214 = vadd.xlane.f32.xlu1 %v2213_v59 }
0x112e   :  { %v2210_v14 = vsel %vm601_vm4, %v4078_v11, 0.0 }
0x112f   :  { %2211 = vadd.xlane.f32.xlu0 %v2210_v14 }
0x11b6   :  { %v2215_v17 = vpop.xlane.xlu1 %2214 }
0x11b7   :  { %4079 = vrcp.f32 %v2215_v17 }
0x11b8   :  { %v2212_v20 = vpop.xlane.xlu0 %2211 }
0x11b9   :  { %4081 = vrcp.f32 %v2212_v20  ;;  %v3472_v20 = vld [vmem:[%s4927_s14 + $0x3] ss:$0 sm:$0xff] }
0x11c4   :  { %v4080_v37 = vpop.eup %4079 }
0x11c5   :  { %v2219_v19 = vmul.f32 %v4080_v37, %v4076_v10 }
0x11c6   :  { %v4082_v21 = vpop.eup %4081 }
0x11c7   :  { %v2221_v23 = vpack.c.bf16 %v2219_v19, %v2219_v19  ;;  %v2218_v25 = vmul.f32 %v4082_v21, %v4078_v11 }
0x11c9   :  { %3888 = vmatmul.mubr.msk.bf16.vlgmr.msra.gmra.mxu0 %vm601_vm4, %v2221_v23  ;;  %v2220_v27 = vpack.c.bf16 %v2218_v25, %v2218_v25 }
0x11ca   :  { %3900 = vmatpush3.bf16.msra.mxu0 %v4025_v39  ;;  %3903 = vmatprep.mubr.msk.bf16.mxu0 %vm4111_vm1, %v4110_v15 }
0x11cb   :  { %3882 = vmatmul.mubr.msk.bf16.vlgmr.msra.gmra.mxu1 %vm601_vm4, %v2220_v27  ;;  %3901 = vmatprep.subr.bf16.mxu0 %v4110_v15 }
0x11cc   :  { %3892 = vmatpush3.bf16.msra.mxu1 %v4026_v26  ;;  %3895 = vmatprep.mubr.msk.bf16.mxu1 %vm4111_vm1, %v4110_v15 }
0x11cd   :  { %3893 = vmatprep.subr.bf16.mxu1 %v4110_v15 }
0x11ce   :  { %3902 = vmatpush3.bf16.msra.mxu0 %v4027_v28 }
0x11cf   :  { %3915 = vmatprep.subr.mxu0 %v4628_v56 }
0x11d0   :  { %3894 = vmatpush3.bf16.msra.mxu1 %v4028_v29 }
0x11d1   :  { %3904 = vmatmul.mubr.msk.bf16.vlgmr.msra.gmra.mxu0 %vm86_vm0, %v4603_v12  ;;  %3907 = vmatprep.subr.bf16.mxu1 %v4110_v15 }
0x11d2   :  { %3916 = vmatpush3.msra.mxu0 %v4628_v56 }
0x11d3   :  { %3896 = vmatmul.mubr.msk.bf16.vlgmr.msra.gmra.mxu1 %vm86_vm0, %v4603_v12  ;;  %3917 = vmatprep.subr.mxu0 %v4637_v57 }
0x11d4   :  { %3908 = vmatpush3.bf16.msra.mxu1 %v4029_v30  ;;  %3911 = vmatprep.mubr.msk.bf16.mxu1 %vm4111_vm1, %v4110_v15 }
0x11d5   :  { %3909 = vmatprep.subr.bf16.mxu1 %v4110_v15  ;;  %3918 = vmatpush3.msra.mxu0 %v4637_v57 }
0x11d6   :  { %3922 = vmatprep.subr.mxu0 %v4628_v56 }
0x11d8   :  { %3910 = vmatpush3.bf16.msra.mxu1 %v4030_v32 }
0x11d9   :  { %3929 = vmatprep.subr.bf16.mxu1 %v4110_v15 }
0x11db   :  { %3912 = vmatmul.mubr.msk.bf16.vlgmr.msra.gmra.mxu1 %vm86_vm0, %v4603_v12  ;;  %v3454_v12 = vld [vmem:[%s4963_s10 + $0x3] ss:$0 sm:$0xff] }
0x11dc   :  { %3931 = vmatprep.mubr.msk.bf16.mxu1 %vm4111_vm1, %v4110_v15 }
0x1289   :  { %v4758_v33 = vpop.f32.mrf.mxu0 }
0x128b   :  { %v4760_v31 = vpop.f32.mrf.mxu1  ;;  %v3889_v36 = vpop.f32.mrf.mxu0 }
0x128c   :  { %v2314_v38 = vpack.c.bf16 %v4758_v33, %v4760_v31 }
0x128d   :  { %v3883_v40 = vpop.f32.mrf.mxu1  ;;  %v2311_v41 = vpop.f32.mrf.mxu0 }
0x128f   :  { %v2265_v42 = vpop.f32.mrf.mxu1  ;;  %v3890_v43 = vpop.f32.mrf.mxu0 }
0x1291   :  { %v3884_v44 = vpop.f32.mrf.mxu1  ;;  %v2443_v45 = vpop.f32.mrf.mxu0 }
0x1292   :  { %v2444_v58 = vadd.f32 %v3463_v51, %v2443_v45 }
0x1293   :  { %v2377_v46 = vpop.f32.mrf.mxu1  ;;  %v3905_v47 = vpop.f32.mrf.mxu0 }
0x1294   :  { %v2378_v48 = vadd.f32 %v3454_v12, %v2377_v46 }
0x1295   :  { %v3897_v49 = vpop.f32.mrf.mxu1  ;;  %v2446_v50 = vpop.f32.mrf.mxu0 }
0x1296   :  { %3919 = vmatprep.mubr.msk.f32.mxu0 %vm328_vm2, %v2378_v48  ;;  %v2447_v1 = vadd.f32 %v3463_v51, %v2446_v50  ;;  %v2516_v59 = vmul.f32 %v4675_v22, %v2378_v48 }
0x1297   :  { %v2380_v13 = vpop.f32.mrf.mxu1  ;;  %v3906_v16 = vpop.f32.mrf.mxu0 }
0x1298   :  { %v2381_v55 = vadd.f32 %v3454_v12, %v2380_v13  ;;  %v2604_v6 = vmul.f32 %v4661_v18, %v2447_v1 }
0x1299   :  { %v3898_v61 = vpop.f32.mrf.mxu1 }
0x129a   :  { %3920 = vmatmul.mubr.msk.f32.vlgmr.msra.gmra.mxu0 %vm328_vm2, %v2381_v55  ;;  %v2517_v60 = vmul.f32 %v4661_v18, %v2381_v55 }
0x129b   :  { %v2509_v0 = vpop.f32.mrf.mxu1  ;;  %3923 = vmatpush3.msra.mxu0 %v4628_v56  ;;  %3926 = vmatprep.mubr.msk.f32.mxu0 %vm328_vm2, %v2444_v58 }
0x129c   :  { %3924 = vmatprep.subr.mxu0 %v4637_v57  ;;  %v2510_v18 = vadd.f32 %v3472_v20, %v2509_v0 }
0x129d   :  { %v3913_v2 = vpop.f32.mrf.mxu1  ;;  %3925 = vmatpush3.msra.mxu0 %v4637_v57  ;;  %v2603_v57 = vmul.f32 %v4675_v22, %v2444_v58 }
0x129e   :  { %3927 = vmatmul.mubr.msk.f32.vlgmr.msra.gmra.mxu0 %vm328_vm2, %v2447_v1  ;;  %3935 = vmatprep.subr.bf16.mxu0 %v4110_v15  ;;  %v2696_v25 = vpack.c.bf16 %v2510_v18, %v2510_v18  ;;  %v3491_v18 = vld [vmem:[%s4930_s16 + $0x1] ss:$0 sm:$0xff] }
0x129f   :  { %v2512_v3 = vpop.f32.mrf.mxu1  ;;  %3937 = vmatprep.mubr.msk.bf16.mxu0 %vm4111_vm1, %v4110_v15 }
0x12a0   :  { %v2820_v29 = vsel %vm629_vm3, %v2696_v25, 0 }
0x12a1   :  { %v3914_v4 = vpop.f32.mrf.mxu1 }
0x135a   :  { %v3921_v62 = vpop.f32.mrf.mxu0 }
0x135b   :  { %v2600_v7 = vmul.f32 %v4667_v35, %v3921_v62 }
0x135c   :  { %v2590_v5 = vpop.f32.mrf.mxu0 }
0x135d   :  { %v2599_v9 = vmul.f32 %v4681_v24, %v2590_v5  ;;  %v2602_v11 = vadd.f32 %v2600_v7, %v2517_v60 }
0x135e   :  { %v3928_v56 = vpop.f32.mrf.mxu0 }
0x135f   :  { %v2687_v63 = vmul.f32 %v4667_v35, %v3928_v56  ;;  %v2513_v35 = vadd.f32 %v3472_v20, %v2512_v3  ;;  %v2601_v37 = vadd.f32 %v2599_v9, %v2516_v59  ;;  %v2691_v39 = vmul.f32 0.125, %v2602_v11  ;;  %v4031_v56 = vld [vmem:[%s4929_s15 + $0x10] sm:$0xff]  }
0x1360   :  { %v2677_v8 = vpop.f32.mrf.mxu0 }
0x1361   :  { %v2689_v34 = vadd.f32 %v2687_v63, %v2604_v6  ;;  %v2686_v10 = vmul.f32 %v4681_v24, %v2677_v8  ;;  %v2697_v22 = vpack.c.bf16 %v2513_v35, %v2513_v35  ;;  %v2690_v24 = vmul.f32 0.125, %v2601_v37  ;;  %v4032_v63 = vld [vmem:[%s4929_s15 + $0x18] sm:$0xff]  }
0x1362   :  { %v2693_v26 = vpack.c.bf16 %v2691_v39, %v2691_v39 }
0x1363   :  { %v2695_v14 = vpack.c.bf16 %v2689_v34, %v2689_v34  ;;  %v2688_v17 = vadd.f32 %v2686_v10, %v2603_v57  ;;  %v2866_v27 = vsel %vm629_vm3, %v2697_v22, 0  ;;  %v2692_v28 = vpack.c.bf16 %v2690_v24, %v2690_v24 }
0x1364   :  { %v3013_v24 = vmul.f32 2.0, %v4596_v53 }
0x1365   :  { %v2694_v19 = vpack.c.bf16 %v2688_v17, %v2688_v17  ;;  %v2748_v21 = vsel %vm328_vm2, %v2695_v14, 0 }
0x1366   :  { %3936 = vmatpush3.bf16.xpose.msra.mxu0 %v2748_v21 }
0x1367   :  { %v2702_v23 = vsel %vm328_vm2, %v2694_v19, 0  ;;  %3947 = vmatprep.subr.bf16.mxu0 %v4110_v15  ;;  %v3012_v19 = vmul.f32 2.0, %v4594_v52 }
0x1368   :  { %3930 = vmatpush3.bf16.xpose.msra.mxu1 %v2702_v23 }
0x1369   :  { %3941 = vmatprep.subr.bf16.mxu1 %v4110_v15 }
0x136d   :  { %3938 = vmatmul.mubr.msk.bf16.vlgmr.msra.gmra.mxu0 %vm328_vm2, %v2693_v26 }
0x136e   :  { %3948 = vmatpush3.bf16.msra.mxu0 %v2866_v27  ;;  %3949 = vmatprep.mubr.msk.bf16.mxu0 %vm4111_vm1, %v4110_v15 }
0x136f   :  { %3932 = vmatmul.mubr.msk.bf16.vlgmr.msra.gmra.mxu1 %vm328_vm2, %v2692_v28  ;;  %3959 = vmatprep.subr.bf16.mxu0 %v4110_v15 }
0x1370   :  { %3942 = vmatpush3.bf16.msra.mxu1 %v2820_v29  ;;  %3943 = vmatprep.mubr.msk.bf16.mxu1 %vm4111_vm1, %v4110_v15 }
0x1371   :  { %3953 = vmatprep.subr.bf16.mxu1 %v4110_v15 }
0x142d   :  { %v2784_v30 = vpop.f32.mrf.mxu0 }
0x142e   :  { %v2785_v32 = vadd.f32 %v4706_v54, %v2784_v30 }
0x142f   :  { %v2738_v36 = vpop.f32.mrf.mxu1  ;;  %v3939_v40 = vpop.f32.mrf.mxu0 }
0x1430   :  { %v2791_v41 = vmul.f32 2.0, %v2785_v32  ;;  %v2739_v42 = vadd.f32 %v4706_v54, %v2738_v36 }
0x1431   :  { %v3933_v43 = vpop.f32.mrf.mxu1  ;;  %v2787_v44 = vpop.f32.mrf.mxu0 }
0x1432   :  { %v2790_v45 = vmul.f32 2.0, %v2739_v42  ;;  %v2795_v12 = vsel %vm601_vm4, %v2791_v41, -inf }
0x1433   :  { %2796 = vmax.xlane.f32.xlu1 %v2795_v12  ;;  %v2741_v46 = vpop.f32.mrf.mxu1  ;;  %v3940_v47 = vpop.f32.mrf.mxu0  ;;  %v4033_v12 = vld [vmem:[%s4931_s17 + $0x18] sm:$0xff]  }
0x1434   :  { %v2792_v48 = vsel %vm601_vm4, %v2790_v45, -inf  ;;  %v4034_v46 = vld [vmem:[%s4931_s17 + $0x10] sm:$0xff]  }
0x1435   :  { %2793 = vmax.xlane.f32.xlu0 %v2792_v48  ;;  %v3934_v49 = vpop.f32.mrf.mxu1 }
0x14bc   :  { %v2797_v50 = vpop.xlane.xlu1 %2796 }
0x14bd   :  { %v2799_v51 = vsub.f32 %v2791_v41, %v2797_v50 }
0x14be   :  { %v2794_v13 = vpop.xlane.xlu0 %2793 }
0x14bf   :  { %v2802_v16 = vmul.f32 1.442695, %v2799_v51  ;;  %v2798_v55 = vsub.f32 %v2790_v45, %v2794_v13 }
0x14c1   :  { %4083 = vpow2.f32 %v2802_v16  ;;  %v2800_v58 = vmul.f32 1.442695, %v2798_v55 }
0x14c3   :  { %4085 = vpow2.f32 %v2800_v58  ;;  %v3494_v58 = vld [vmem:[%s4932_s7 + $0x1] ss:$0 sm:$0xff] }
0x14ce   :  { %v4084_v54 = vpop.eup %4083 }
0x14cf   :  { %v2807_v61 = vsel %vm601_vm4, %v4084_v54, 0.0 }
0x14d0   :  { %v4086_v0 = vpop.eup %4085  ;;  %2808 = vadd.xlane.f32.xlu1 %v2807_v61 }
0x14d1   :  { %v2804_v1 = vsel %vm601_vm4, %v4086_v0, 0.0 }
0x14d2   :  { %2805 = vadd.xlane.f32.xlu0 %v2804_v1  ;;  %v3495_v1 = vld [vmem:[%s4933_s8 + $0x1] ss:$0 sm:$0xff] }
0x1559   :  { %v2809_v2 = vpop.xlane.xlu1 %2808 }
0x155a   :  { %4087 = vrcp.f32 %v2809_v2 }
0x155b   :  { %v2806_v3 = vpop.xlane.xlu0 %2805 }
0x155c   :  { %4089 = vrcp.f32 %v2806_v3 }
0x1567   :  { %v4088_v4 = vpop.eup %4087 }
0x1568   :  { %v2813_v62 = vmul.f32 %v4088_v4, %v4084_v54 }
0x1569   :  { %v4090_v5 = vpop.eup %4089 }
0x156a   :  { %v2815_v6 = vpack.c.bf16 %v2813_v62, %v2813_v62  ;;  %v2812_v7 = vmul.f32 %v4090_v5, %v4086_v0  ;;  %v4035_v5 = vld [vmem:[%s4934_s19 + $0x78] sm:$0xff]  }
0x156c   :  { %3950 = vmatmul.mubr.msk.bf16.vlgmr.msra.gmra.mxu0 %vm601_vm4, %v2815_v6  ;;  %v2814_v57 = vpack.c.bf16 %v2812_v7, %v2812_v7  ;;  %v4037_v6 = vld [vmem:[%s4934_s19 + $0x68] sm:$0xff]   ;;  %v4038_v7 = vld [vmem:[%s4934_s19 + $0x60] sm:$0xff]  }
0x156d   :  { %3960 = vmatpush3.bf16.msra.mxu0 %v4031_v56  ;;  %3961 = vmatprep.mubr.msk.bf16.mxu0 %vm4111_vm1, %v4110_v15  ;;  %v4036_v56 = vld [vmem:[%s4934_s19 + $0x70] sm:$0xff]  }
0x156e   :  { %3944 = vmatmul.mubr.msk.bf16.vlgmr.msra.gmra.mxu1 %vm601_vm4, %v2814_v57  ;;  %3973 = vmatprep.subr.bf16.mxu0 %v4110_v15  ;;  %v4040_v57 = vld [vmem:[%s4934_s19 + $0x50] sm:$0xff]  }
0x156f   :  { %3954 = vmatpush3.bf16.msra.mxu1 %v4032_v63  ;;  %3955 = vmatprep.mubr.msk.bf16.mxu1 %vm4111_vm1, %v4110_v15  ;;  %v4039_v63 = vld [vmem:[%s4934_s19 + $0x58] sm:$0xff]  }
0x1570   :  { %3965 = vmatprep.subr.bf16.mxu1 %v4110_v15 }
0x1574   :  { %3962 = vmatmul.mubr.msk.bf16.vlgmr.msra.gmra.mxu0 %vm328_vm2, %v2314_v38 }
0x1575   :  { %3989 = vmatprep.mubr.msk.bf16.mxu0 %vm4111_vm1, %v4110_v15  ;;  %3974 = vmatpush3.bf16.msra.mxu0 %v4035_v5  ;;  %v3531_v5 = vld [vmem:[%s4937_s21] ss:$0 sm:$0xff] }
0x1576   :  { %3975 = vmatprep.subr.bf16.mxu0 %v4110_v15 }
0x1579   :  { %3976 = vmatpush3.bf16.msra.mxu0 %v4036_v56 }
0x157a   :  { %3977 = vmatprep.subr.bf16.mxu0 %v4110_v15 }
0x157d   :  { %3978 = vmatpush3.bf16.msra.mxu0 %v4037_v6  ;;  %v3532_v6 = vld [vmem:[%s4938_s22] ss:$0 sm:$0xff] }
0x157e   :  { %3979 = vmatprep.subr.bf16.mxu0 %v4110_v15 }
0x1581   :  { %3980 = vmatpush3.bf16.msra.mxu0 %v4038_v7 }
0x1582   :  { %3981 = vmatprep.subr.bf16.mxu0 %v4110_v15 }
0x1585   :  { %3982 = vmatpush3.bf16.msra.mxu0 %v4039_v63 }
0x1586   :  { %3983 = vmatprep.subr.bf16.mxu0 %v4110_v15 }
0x1589   :  { %3984 = vmatpush3.bf16.msra.mxu0 %v4040_v57 }
0x158a   :  { %3985 = vmatprep.subr.bf16.mxu0 %v4110_v15 }
0x162c   :  { %v2902_v8 = vpop.f32.mrf.mxu0 }
0x162e   :  { %v2856_v60 = vpop.f32.mrf.mxu1  ;;  %v3951_v9 = vpop.f32.mrf.mxu0 }
0x162f   :  { %v2908_v34 = vpack.c.bf16 %v2902_v8, %v2856_v60  ;;  %v4041_v8 = vld [vmem:[%s4934_s19 + $0x48] sm:$0xff]   ;;  %v4042_v60 = vld [vmem:[%s4934_s19 + $0x40] sm:$0xff]  }
0x1630   :  { %v3945_v10 = vpop.f32.mrf.mxu1  ;;  %v2905_v59 = vpop.f32.mrf.mxu0  ;;  %3986 = vmatpush3.bf16.msra.mxu0 %v4041_v8  ;;  %v3501_v9 = vld [vmem:[%s4935_s18 + $0x1] ss:$0 sm:$0xff] }
0x1631   :  { %3956 = vmatmul.mubr.msk.bf16.vlgmr.msra.gmra.mxu1 %vm328_vm2, %v2908_v34  ;;  %3987 = vmatprep.subr.bf16.mxu0 %v4110_v15 }
0x1632   :  { %v2859_v11 = vpop.f32.mrf.mxu1  ;;  %v3952_v14 = vpop.f32.mrf.mxu0  ;;  %3969 = vmatprep.mubr.msk.bf16.mxu1 %vm4111_vm1, %v4110_v15  ;;  %3966 = vmatpush3.bf16.msra.mxu1 %v4033_v12 }
0x1633   :  { %3967 = vmatprep.subr.bf16.mxu1 %v4110_v15 }
0x1634   :  { %v3946_v17 = vpop.f32.mrf.mxu1  ;;  %v3005_v33 = vpop.f32.mrf.mxu0  ;;  %3988 = vmatpush3.bf16.msra.mxu0 %v4042_v60 }
0x1636   :  { %v3963_v31 = vpop.f32.mrf.mxu0  ;;  %3968 = vmatpush3.bf16.msra.mxu1 %v4034_v46 }
0x1638   :  { %v3008_v38 = vpop.f32.mrf.mxu0 }
0x163a   :  { %v3964_v20 = vpop.f32.mrf.mxu0 }
0x16f1   :  { %v2955_v35 = vpop.f32.mrf.mxu1 }
0x16f2   :  { %v3006_v37 = vadd.f32 %v3005_v33, %v2955_v35 }
0x16f3   :  { %v3957_v21 = vpop.f32.mrf.mxu1 }
0x16f4   :  { %v3014_v39 = vadd.f32 %v3012_v19, %v3006_v37 }
0x16f5   :  { %v2958_v23 = vpop.f32.mrf.mxu1 }
0x16f6   :  { %v3009_v22 = vadd.f32 %v3008_v38, %v2958_v23  ;;  %v3024_v25 = vadd.f32 %v3491_v18, %v3014_v39 }
0x16f7   :  { %v3958_v26 = vpop.f32.mrf.mxu1 }
0x16f8   :  { %v3015_v27 = vadd.f32 %v3013_v24, %v3009_v22  ;;  %v3030_v28 = vsel %vm86_vm0, %v3024_v25, 0.0 }
0x16f9   :  { %3031 = vadd.xlane.f32.xlu0 %v3030_v28 }
0x16fa   :  { %v3025_v29 = vadd.f32 %v3491_v18, %v3015_v27 }
0x16fc   :  { %v3033_v30 = vsel %vm86_vm0, %v3025_v29, 0.0 }
0x16fd   :  { %3034 = vadd.xlane.f32.xlu1 %v3033_v30  ;;  %v3522_v30 = vld [vmem:[%s4936_s20 + $0x1] ss:$0 sm:$0xff] }
0x1782   :  { %v3032_v52 = vpop.xlane.xlu0 %3031 }
0x1783   :  { %v3036_v32 = vmul.f32 0.03125, %v3032_v52 }
0x1785   :  { %v3038_v36 = vsub.f32 %v3024_v25, %v3036_v32 }
0x1786   :  { %v3035_v40 = vpop.xlane.xlu1 %3034 }
0x1787   :  { %v3037_v41 = vmul.f32 0.03125, %v3035_v40  ;;  %v3040_v42 = vmul.f32 %v3038_v36, %v3038_v36 }
0x1789   :  { %v3039_v43 = vsub.f32 %v3025_v29, %v3037_v41  ;;  %v3042_v44 = vsel %vm86_vm0, %v3040_v42, 0.0 }
0x178a   :  { %3043 = vadd.xlane.f32.xlu0 %v3042_v44 }
0x178b   :  { %v3041_v53 = vmul.f32 %v3039_v43, %v3039_v43 }
0x178d   :  { %v3045_v45 = vsel %vm86_vm0, %v3041_v53, 0.0 }
0x178e   :  { %3046 = vadd.xlane.f32.xlu1 %v3045_v45 }
0x1813   :  { %v3044_v47 = vpop.xlane.xlu0 %3043 }
0x1814   :  { %v3048_v48 = vmul.f32 0.03125, %v3044_v47 }
0x1816   :  { %v3050_v49 = vadd.f32 1e-05, %v3048_v48 }
0x1817   :  { %v3047_v50 = vpop.xlane.xlu1 %3046 }
0x1818   :  { %4091 = vrsqrt.f32 %v3050_v49  ;;  %v3049_v51 = vmul.f32 0.03125, %v3047_v50 }
0x181a   :  { %v3051_v13 = vadd.f32 1e-05, %v3049_v51 }
0x181c   :  { %4093 = vrsqrt.f32 %v3051_v13 }
0x1825   :  { %v4092_v16 = vpop.eup %4091 }
0x1826   :  { %v3054_v55 = vmul.f32 %v4092_v16, %v3038_v36 }
0x1828   :  { %v3062_v0 = vmul.f32 %v3494_v58, %v3054_v55 }
0x1829   :  { %v4094_v54 = vpop.eup %4093 }
0x182a   :  { %v3055_v61 = vmul.f32 %v4094_v54, %v3039_v43  ;;  %v3070_v3 = vadd.f32 %v3495_v1, %v3062_v0 }
0x182c   :  { %v3063_v2 = vmul.f32 %v3494_v58, %v3055_v61  ;;  %v3275_v36 = vmul.f32 2.0, %v3070_v3 }
0x182e   :  { %v4856_v4 = vadd.f32 %v3495_v1, %v3063_v2 }
0x1830   :  { %v3072_v62 = vpack.c.bf16 %v4856_v4, %v3070_v3  ;;  %v3276_v53 = vmul.f32 2.0, %v4856_v4 }
0x1832   :  { %3970 = vmatmul.mubr.msk.bf16.vlgmr.msra.gmra.mxu1 %vm86_vm0, %v3072_v62 }
0x18f2   :  { %v3135_v34 = vpop.f32.mrf.mxu1 }
0x18f3   :  { %v3136_v10 = vadd.f32 %v3501_v9, %v3135_v34 }
0x18f4   :  { %v3971_v59 = vpop.f32.mrf.mxu1 }
0x18f5   :  { %v3146_v11 = vmul.f32 0.044715, %v3136_v10  ;;  %v3144_v38 = vmul.f32 0.7978846, %v3136_v10  ;;  %v3142_v24 = vmul.f32 0.5, %v3136_v10 }
0x18f6   :  { %v3138_v14 = vpop.f32.mrf.mxu1 }
0x18f7   :  { %v3148_v17 = vmul.f32 %v3146_v11, %v3136_v10  ;;  %v3139_v33 = vadd.f32 %v3501_v9, %v3138_v14 }
0x18f8   :  { %v3972_v31 = vpop.f32.mrf.mxu1 }
0x18f9   :  { %v3150_v20 = vadd.f32 1.0, %v3148_v17  ;;  %v3147_v35 = vmul.f32 0.044715, %v3139_v33  ;;  %v3145_v15 = vmul.f32 0.7978846, %v3139_v33  ;;  %v3143_v25 = vmul.f32 0.5, %v3139_v33 }
0x18fb   :  { %v3152_v37 = vmul.f32 %v3150_v20, %v3144_v38  ;;  %v3149_v19 = vmul.f32 %v3147_v35, %v3139_v33 }
0x18fd   :  { %4095 = vtanh.f32 %v3152_v37  ;;  %v3151_v21 = vadd.f32 1.0, %v3149_v19 }
0x18ff   :  { %v3153_v18 = vmul.f32 %v3151_v21, %v3145_v15 }
0x1901   :  { %4097 = vtanh.f32 %v3153_v18 }
0x190a   :  { %v4096_v39 = vpop.eup %4095 }
0x190b   :  { %v3156_v23 = vadd.f32 1.0, %v4096_v39 }
0x190d   :  { %v3158_v27 = vmul.f32 %v3156_v23, %v3142_v24 }
0x190e   :  { %v4098_v22 = vpop.eup %4097 }
0x190f   :  { %v3157_v26 = vadd.f32 1.0, %v4098_v22 }
0x1911   :  { %v3159_v28 = vmul.f32 %v3157_v26, %v3143_v25 }
0x1913   :  { %v3160_v29 = vpack.c.bf16 %v3159_v28, %v3158_v27 }
0x1915   :  { %3990 = vmatmul.mubr.bf16.vlgmr.msra.gmra.mxu0 %v3160_v29 }
0x19d5   :  { %v3268_v52 = vpop.f32.mrf.mxu0 }
0x19d6   :  { %v3269_v32 = vadd.f32 %v3522_v30, %v3268_v52 }
0x19d7   :  { %v3991_v40 = vpop.f32.mrf.mxu0 }
0x19d8   :  { %v3277_v41 = vadd.f32 %v3275_v36, %v3269_v32 }
0x19d9   :  { %v3271_v42 = vpop.f32.mrf.mxu0 }
0x19da   :  { %v3272_v43 = vadd.f32 %v3522_v30, %v3271_v42  ;;  %v3281_v44 = vsel %vm86_vm0, %v3277_v41, 0.0 }
0x19db   :  { %3282 = vadd.xlane.f32.xlu0 %v3281_v44  ;;  %v3992_v45 = vpop.f32.mrf.mxu0 }
0x19dc   :  { %v3278_v12 = vadd.f32 %v3276_v53, %v3272_v43 }
0x19de   :  { %v3284_v46 = vsel %vm86_vm0, %v3278_v12, 0.0 }
0x19df   :  { %3285 = vadd.xlane.f32.xlu1 %v3284_v46 }
0x1a64   :  { %v3283_v47 = vpop.xlane.xlu0 %3282 }
0x1a65   :  { %v3287_v48 = vmul.f32 0.03125, %v3283_v47 }
0x1a67   :  { %v3289_v49 = vsub.f32 %v3277_v41, %v3287_v48 }
0x1a68   :  { %v3286_v50 = vpop.xlane.xlu1 %3285 }
0x1a69   :  { %v3288_v51 = vmul.f32 0.03125, %v3286_v50  ;;  %v3291_v13 = vmul.f32 %v3289_v49, %v3289_v49 }
0x1a6b   :  { %v3290_v16 = vsub.f32 %v3278_v12, %v3288_v51  ;;  %v3293_v55 = vsel %vm86_vm0, %v3291_v13, 0.0 }
0x1a6c   :  { %3294 = vadd.xlane.f32.xlu0 %v3293_v55 }
0x1a6d   :  { %v3292_v58 = vmul.f32 %v3290_v16, %v3290_v16 }
0x1a6f   :  { %v3296_v54 = vsel %vm86_vm0, %v3292_v58, 0.0 }
0x1a70   :  { %3297 = vadd.xlane.f32.xlu1 %v3296_v54 }
0x1af5   :  { %v3295_v61 = vpop.xlane.xlu0 %3294 }
0x1af6   :  { %v3299_v0 = vmul.f32 0.03125, %v3295_v61 }
0x1af8   :  { %v3301_v1 = vadd.f32 1e-05, %v3299_v0 }
0x1af9   :  { %v3298_v2 = vpop.xlane.xlu1 %3297 }
0x1afa   :  { %4099 = vrsqrt.f32 %v3301_v1  ;;  %v3300_v3 = vmul.f32 0.03125, %v3298_v2 }
0x1afc   :  { %v3302_v4 = vadd.f32 1e-05, %v3300_v3 }
0x1afe   :  { %4101 = vrsqrt.f32 %v3302_v4 }
0x1b07   :  { %v4100_v62 = vpop.eup %4099 }
0x1b08   :  { %v3305_v56 = vmul.f32 %v4100_v62, %v3289_v49 }
0x1b0a   :  { %v3313_v7 = vmul.f32 %v3531_v5, %v3305_v56 }
0x1b0b   :  { %v4102_v63 = vpop.eup %4101 }
0x1b0c   :  { %v3321_v57 = vadd.f32 %v3532_v6, %v3313_v7  ;;  %v3306_v8 = vmul.f32 %v4102_v63, %v3290_v16 }
0x1b0e   :  { %3323 = vst.msk [vmem:[%s4939_s23] sm:$0xff] %vm86_vm0, %v3321_v57  ;;  %v3314_v60 = vmul.f32 %v3531_v5, %v3306_v8 }
0x1b10   :  { %v3322_v9 = vadd.f32 %v3532_v6, %v3314_v60 }
0x1b12   :  { %3324 = vst.msk [vmem:[%s4939_s23 + $0x8] sm:$0xff] %vm86_vm0, %v3322_v9 }

</bundles_post_ra>
